<compile_context>
chip_gen: v7x
topology: tpu7x:2x2x1
jax: 0.10.0
libtpu: 0.0.40
codegen_flags: <defaults>
</compile_context>

<pallas_src>
import jax
import jax.numpy as jnp
from jax.experimental import pallas as pl
from jax.experimental.pallas import tpu as pltpu

# Logical feature dims (PyTorch FullyConnected: 784 -> 300 -> 100 -> 10).
D_IN, D_H1, D_H2, D_OUT = 784, 300, 100, 10
# Lane-padded *output* dims of each layer. Contraction dims (784 / 384 / 128) are 8-aligned
# already, so no K padding is needed anywhere.
P_H1, P_H2, P_OUT = 384, 128, 128

TB_MAX = 2048                      # max batch rows per grid step
_VMEM_LIMIT = 48 * 1024 * 1024     # explicit scoped-VMEM limit (safe on v5e/v6e/v7x)


def _mlp_kernel(x_ref, w1_ref, b1_ref, w2_ref, b2_ref, w3_ref, b3_ref, out_ref):
    # Cast x to bf16 in-kernel (VPU) so the MXU runs in its native dtype; accumulate in f32,
    # bias-add / ReLU in f32. Padding rows/cols are zero, so padding is numerically neutral.
    x = x_ref[...].astype(jnp.bfloat16)
    # Layer 1: Linear(784->300) + ReLU   (dropout = identity in eval mode)
    h1 = jnp.dot(x, w1_ref[...], preferred_element_type=jnp.float32) + b1_ref[...]
    h1 = jnp.maximum(h1, 0.0).astype(jnp.bfloat16)
    # Layer 2: Linear(300->100) + ReLU
    h2 = jnp.dot(h1, w2_ref[...], preferred_element_type=jnp.float32) + b2_ref[...]
    h2 = jnp.maximum(h2, 0.0).astype(jnp.bfloat16)
    # Layer 3: Linear(100->10)
    out_ref[...] = (
        jnp.dot(h2, w3_ref[...], preferred_element_type=jnp.float32) + b3_ref[...]
    ).astype(out_ref.dtype)


def _round_up(n, m):
    return (n + m - 1) // m * m


def _select_tiling(B):
    """Pick (TB, B_pad, num_tiles): bounded batch padding + >=2 grid steps for large B (v7x)."""
    num_tiles = pl.cdiv(B, TB_MAX)
    if B >= 512 and num_tiles == 1:
        num_tiles = 2          # let the "parallel" axis split across the 2 v7x TensorCores
    mult = 256 if B >= 512 else 8   # full MXU M-dim for big batches; 8-sublane otherwise
    TB = _round_up(pl.cdiv(B, num_tiles), mult)
    return TB, num_tiles * TB, num_tiles


def _pad2(a, rows, cols):
    pr, pc = rows - a.shape[0], cols - a.shape[1]
    if pr == 0 and pc == 0:
        return a
    return jnp.pad(a, ((0, pr), (0, pc)))


def _forward(x, w1, b1, w2, b2, w3, b3, out_dtype, keep_padded, single_buffer_weights):
    B = x.shape[0]
    TB, B_pad, num_tiles = _select_tiling(B)

    # x: no feature-lane pad, no wrapper cast. Pad the batch axis only if the grid needs it.
    x_p = x if B_pad == B else jnp.pad(x, ((0, B_pad - B), (0, 0)))

    # Weights: bf16, padded on output dims only (zero pad -> exactly neutral). Biases stay f32.
    w1_p = _pad2(w1, D_IN, P_H1).astype(jnp.bfloat16)
    w2_p = _pad2(w2, P_H1, P_H2).astype(jnp.bfloat16)
    w3_p = _pad2(w3, P_H2, P_OUT).astype(jnp.bfloat16)
    b1_p = _pad2(b1, 1, P_H1)
    b2_p = _pad2(b2, 1, P_H2)
    b3_p = _pad2(b3, 1, P_OUT)

    cost = pl.CostEstimate(
        flops=2 * B_pad * (D_IN * P_H1 + P_H1 * P_H2 + P_H2 * P_OUT),
        transcendentals=0,
        bytes_accessed=(
            x_p.size * x_p.dtype.itemsize
            + (w1_p.size + w2_p.size + w3_p.size) * 2
            + (b1_p.size + b2_p.size + b3_p.size) * 4
            + B_pad * P_OUT * jnp.dtype(out_dtype).itemsize
        ),
    )

    const = lambda i: (0, 0)  # weights/biases: same block every step -> VMEM-resident
    wkw = dict(pipeline_mode=pl.Buffered(1)) if single_buffer_weights else {}

    out_p = pl.pallas_call(
        _mlp_kernel,
        out_shape=jax.ShapeDtypeStruct((B_pad, P_OUT), out_dtype),
        grid_spec=pltpu.PrefetchScalarGridSpec(
            num_scalar_prefetch=0,
            grid=(num_tiles,),
            in_specs=[
                pl.BlockSpec((TB, D_IN), lambda i: (i, 0)),        # x: batch-tiled, pipelined
                pl.BlockSpec((D_IN, P_H1), const, **wkw),
                pl.BlockSpec((1, P_H1), const, **wkw),
                pl.BlockSpec((P_H1, P_H2), const, **wkw),
                pl.BlockSpec((1, P_H2), const, **wkw),
                pl.BlockSpec((P_H2, P_OUT), const, **wkw),
                pl.BlockSpec((1, P_OUT), const, **wkw),
            ],
            out_specs=pl.BlockSpec((TB, P_OUT), lambda i: (i, 0)),  # lane-dense output store
        ),
        compiler_params=pltpu.CompilerParams(
            dimension_semantics=("parallel",),   # 2-TC split on v7x; harmless on v5e/v6e
            vmem_limit_bytes=_VMEM_LIMIT,
        ),
        cost_estimate=cost,
    )(x_p, w1_p, b1_p, w2_p, b2_p, w3_p, b3_p)

    if keep_padded:
        return out_p            # (B_pad, 128): let the consumer fuse the slice
    return out_p[:B, :D_OUT]


def fully_connected_forward(x, w1, b1, w2, b2, w3, b3, *,
                            out_dtype=jnp.float32, keep_padded=False):
    """FullyConnected forward (eval mode). x: (B, 784) f32; weights (in, out); biases (1, out).

    Returns (B, 10) in `out_dtype`. Pass out_dtype=jnp.bfloat16 and/or keep_padded=True to cut
    output HBM traffic when the downstream consumer tolerates it.
    """
    try:
        # Preferred: constant weight/bias blocks single-buffered (fetched once).
        return _forward(x, w1, b1, w2, b2, w3, b3, out_dtype, keep_padded, True)
    except Exception:
        # Fallback for JAX versions whose TPU lowering rejects pipeline_mode=pl.Buffered(1).
        return _forward(x, w1, b1, w2, b2, w3, b3, out_dtype, keep_padded, False)


def init_params(key):
    """Deterministic PyTorch-Linear-style init: U(-1/sqrt(fan_in), 1/sqrt(fan_in))."""
    dims = [(D_IN, D_H1), (D_H1, D_H2), (D_H2, D_OUT)]
    params = []
    for i, (fan_in, fan_out) in enumerate(dims):
        kw, kb = jax.random.split(jax.random.fold_in(key, i))
        bound = 1.0 / (fan_in ** 0.5)
        # Stored as (in, out): equivalent to transposing the (out, in) PyTorch weight.
        w = jax.random.uniform(kw, (fan_in, fan_out), jnp.float32, -bound, bound)
        b = jax.random.uniform(kb, (1, fan_out), jnp.float32, -bound, bound)
        params += [w, b]
    return params


def _reference(x, w1, b1, w2, b2, w3, b3):
    """Pure-JAX reference with the same arithmetic (bf16 matmul operands, f32 accumulate)."""
    bf = jnp.bfloat16
    h = jnp.maximum(
        jnp.dot(x.astype(bf), w1.astype(bf), preferred_element_type=jnp.float32) + b1, 0.0)
    h = jnp.maximum(
        jnp.dot(h.astype(bf), w2.astype(bf), preferred_element_type=jnp.float32) + b2, 0.0)
    return jnp.dot(h.astype(bf), w3.astype(bf), preferred_element_type=jnp.float32) + b3


if __name__ == "__main__":
    key = jax.random.PRNGKey(0)
    k_x, k_p = jax.random.split(key)

    B = 8
    x = jax.random.normal(k_x, (B, D_IN), jnp.float32)
    w1, b1, w2, b2, w3, b3 = init_params(k_p)

    out = fully_connected_forward(x, w1, b1, w2, b2, w3, b3)
    out = jax.block_until_ready(out)

    ref = _reference(x, w1, b1, w2, b2, w3, b3)
    assert out.shape == (B, D_OUT)
    assert jnp.allclose(out, ref, atol=2e-2, rtol=2e-2), (
        f"max abs err {jnp.max(jnp.abs(out - ref))}")

    print("KERNEL_OK")
</pallas_src>

<mosaic_0001>
module attributes {stable_mosaic.version = 11 : i64} {
  func.func @_mlp_kernel(%arg0: i32, %arg1: memref<8x784xf32, #tpu.memory_space<vmem>>, %arg2: memref<784x384xbf16, #tpu.memory_space<vmem>>, %arg3: memref<1x384xf32, #tpu.memory_space<vmem>>, %arg4: memref<384x128xbf16, #tpu.memory_space<vmem>>, %arg5: memref<1x128xf32, #tpu.memory_space<vmem>>, %arg6: memref<128x128xbf16, #tpu.memory_space<vmem>>, %arg7: memref<1x128xf32, #tpu.memory_space<vmem>>, %arg8: memref<8x128xf32, #tpu.memory_space<vmem>>) attributes {dimension_semantics = [#tpu.dimension_semantics<parallel>], iteration_bounds = array<i64: 1>, scalar_prefetch = 0 : i64, scratch_operands = 0 : i64, tpu.core_type = #tpu.core_type<tc>, window_params = [{transform_indices = @transform_0, window_bounds = array<i64: 8, 784>}, {pipeline_mode = #tpu.pipeline_mode<synchronous>, transform_indices = @transform_1, window_bounds = array<i64: 784, 384>}, {pipeline_mode = #tpu.pipeline_mode<synchronous>, transform_indices = @transform_2, window_bounds = array<i64: 1, 384>}, {pipeline_mode = #tpu.pipeline_mode<synchronous>, transform_indices = @transform_3, window_bounds = array<i64: 384, 128>}, {pipeline_mode = #tpu.pipeline_mode<synchronous>, transform_indices = @transform_4, window_bounds = array<i64: 1, 128>}, {pipeline_mode = #tpu.pipeline_mode<synchronous>, transform_indices = @transform_5, window_bounds = array<i64: 128, 128>}, {pipeline_mode = #tpu.pipeline_mode<synchronous>, transform_indices = @transform_6, window_bounds = array<i64: 1, 128>}, {transform_indices = @transform_7, window_bounds = array<i64: 8, 128>}]} {
    %c0 = arith.constant 0 : index
    %c0_0 = arith.constant 0 : index
    %0 = vector.load %arg1[%c0, %c0_0] : memref<8x784xf32, #tpu.memory_space<vmem>>, vector<8x784xf32>
    %1 = arith.truncf %0 : vector<8x784xf32> to vector<8x784xbf16>
    %c0_1 = arith.constant 0 : index
    %c0_2 = arith.constant 0 : index
    %2 = vector.load %arg2[%c0_1, %c0_2] : memref<784x384xbf16, #tpu.memory_space<vmem>>, vector<784x384xbf16>
    %cst = arith.constant dense<0.000000e+00> : vector<8x384xf32>
    %3 = tpu.matmul %1, %2, %cst {dimension_numbers = #tpu.dot_dimension_numbers<[1], [0], [0], [1], [0, 0, 1, 1], [], []>} : vector<8x784xbf16>, vector<784x384xbf16>, vector<8x384xf32> -> vector<8x384xf32>
    %c0_3 = arith.constant 0 : index
    %c0_4 = arith.constant 0 : index
    %4 = vector.load %arg3[%c0_3, %c0_4] : memref<1x384xf32, #tpu.memory_space<vmem>>, vector<1x384xf32>
    %5 = vector.broadcast %4 : vector<1x384xf32> to vector<8x384xf32>
    %6 = arith.addf %3, %5 : vector<8x384xf32>
    %cst_5 = arith.constant 0.000000e+00 : f32
    %7 = vector.broadcast %cst_5 : f32 to vector<8x384xf32>
    %8 = arith.maximumf %6, %7 : vector<8x384xf32>
    %9 = arith.truncf %8 : vector<8x384xf32> to vector<8x384xbf16>
    %c0_6 = arith.constant 0 : index
    %c0_7 = arith.constant 0 : index
    %10 = vector.load %arg4[%c0_6, %c0_7] : memref<384x128xbf16, #tpu.memory_space<vmem>>, vector<384x128xbf16>
    %cst_8 = arith.constant dense<0.000000e+00> : vector<8x128xf32>
    %11 = tpu.matmul %9, %10, %cst_8 {dimension_numbers = #tpu.dot_dimension_numbers<[1], [0], [0], [1], [0, 0, 1, 1], [], []>} : vector<8x384xbf16>, vector<384x128xbf16>, vector<8x128xf32> -> vector<8x128xf32>
    %c0_9 = arith.constant 0 : index
    %c0_10 = arith.constant 0 : index
    %12 = vector.load %arg5[%c0_9, %c0_10] : memref<1x128xf32, #tpu.memory_space<vmem>>, vector<1x128xf32>
    %13 = vector.broadcast %12 : vector<1x128xf32> to vector<8x128xf32>
    %14 = arith.addf %11, %13 : vector<8x128xf32>
    %cst_11 = arith.constant 0.000000e+00 : f32
    %15 = vector.broadcast %cst_11 : f32 to vector<8x128xf32>
    %16 = arith.maximumf %14, %15 : vector<8x128xf32>
    %17 = arith.truncf %16 : vector<8x128xf32> to vector<8x128xbf16>
    %c0_12 = arith.constant 0 : index
    %c0_13 = arith.constant 0 : index
    %18 = vector.load %arg6[%c0_12, %c0_13] : memref<128x128xbf16, #tpu.memory_space<vmem>>, vector<128x128xbf16>
    %cst_14 = arith.constant dense<0.000000e+00> : vector<8x128xf32>
    %19 = tpu.matmul %17, %18, %cst_14 {dimension_numbers = #tpu.dot_dimension_numbers<[1], [0], [0], [1], [0, 0, 1, 1], [], []>} : vector<8x128xbf16>, vector<128x128xbf16>, vector<8x128xf32> -> vector<8x128xf32>
    %c0_15 = arith.constant 0 : index
    %c0_16 = arith.constant 0 : index
    %20 = vector.load %arg7[%c0_15, %c0_16] : memref<1x128xf32, #tpu.memory_space<vmem>>, vector<1x128xf32>
    %21 = vector.broadcast %20 : vector<1x128xf32> to vector<8x128xf32>
    %22 = arith.addf %19, %21 : vector<8x128xf32>
    %c0_17 = arith.constant 0 : index
    %c0_18 = arith.constant 0 : index
    %23 = vector.load %arg8[%c0_17, %c0_18] : memref<8x128xf32, #tpu.memory_space<vmem>>, vector<8x128xf32>
    tpu.vector_store %arg8[%c0_17, %c0_18], %22 {strides = array<i32>} : memref<8x128xf32, #tpu.memory_space<vmem>>, vector<8x128xf32>,
    return
  }
  func.func @transform_0(%arg0: i32) -> (i32, i32) {
    %c0_i32 = arith.constant 0 : i32
    %c0_i32_0 = arith.constant 0 : i32
    return %arg0, %c0_i32 : i32, i32
  }
  func.func @transform_1(%arg0: i32) -> (i32, i32) {
    %c0_i32 = arith.constant 0 : i32
    %c0_i32_0 = arith.constant 0 : i32
    %c0_i32_1 = arith.constant 0 : i32
    return %c0_i32, %c0_i32_0 : i32, i32
  }
  func.func @transform_2(%arg0: i32) -> (i32, i32) {
    %c0_i32 = arith.constant 0 : i32
    %c0_i32_0 = arith.constant 0 : i32
    %c0_i32_1 = arith.constant 0 : i32
    return %c0_i32, %c0_i32_0 : i32, i32
  }
  func.func @transform_3(%arg0: i32) -> (i32, i32) {
    %c0_i32 = arith.constant 0 : i32
    %c0_i32_0 = arith.constant 0 : i32
    %c0_i32_1 = arith.constant 0 : i32
    return %c0_i32, %c0_i32_0 : i32, i32
  }
  func.func @transform_4(%arg0: i32) -> (i32, i32) {
    %c0_i32 = arith.constant 0 : i32
    %c0_i32_0 = arith.constant 0 : i32
    %c0_i32_1 = arith.constant 0 : i32
    return %c0_i32, %c0_i32_0 : i32, i32
  }
  func.func @transform_5(%arg0: i32) -> (i32, i32) {
    %c0_i32 = arith.constant 0 : i32
    %c0_i32_0 = arith.constant 0 : i32
    %c0_i32_1 = arith.constant 0 : i32
    return %c0_i32, %c0_i32_0 : i32, i32
  }
  func.func @transform_6(%arg0: i32) -> (i32, i32) {
    %c0_i32 = arith.constant 0 : i32
    %c0_i32_0 = arith.constant 0 : i32
    %c0_i32_1 = arith.constant 0 : i32
    return %c0_i32, %c0_i32_0 : i32, i32
  }
  func.func @transform_7(%arg0: i32) -> (i32, i32) {
    %c0_i32 = arith.constant 0 : i32
    %c0_i32_0 = arith.constant 0 : i32
    return %arg0, %c0_i32 : i32, i32
  }
}

module attributes {stable_mosaic.version = 11 : i64} {
  func.func @_mlp_kernel(%arg0: i32, %arg1: memref<8x784xf32, #tpu.memory_space<vmem>>, %arg2: memref<784x384xbf16, #tpu.memory_space<vmem>>, %arg3: memref<1x384xf32, #tpu.memory_space<vmem>>, %arg4: memref<384x128xbf16, #tpu.memory_space<vmem>>, %arg5: memref<1x128xf32, #tpu.memory_space<vmem>>, %arg6: memref<128x128xbf16, #tpu.memory_space<vmem>>, %arg7: memref<1x128xf32, #tpu.memory_space<vmem>>, %arg8: memref<8x128xf32, #tpu.memory_space<vmem>>) attributes {dimension_semantics = [#tpu.dimension_semantics<parallel>], iteration_bounds = array<i64: 1>, scalar_prefetch = 0 : i64, scratch_operands = 0 : i64, tpu.core_type = #tpu.core_type<tc>, window_params = [{transform_indices = @transform_0, window_bounds = array<i64: 8, 784>}, {pipeline_mode = #tpu.pipeline_mode<synchronous>, transform_indices = @transform_1, window_bounds = array<i64: 784, 384>}, {pipeline_mode = #tpu.pipeline_mode<synchronous>, transform_indices = @transform_2, window_bounds = array<i64: 1, 384>}, {pipeline_mode = #tpu.pipeline_mode<synchronous>, transform_indices = @transform_3, window_bounds = array<i64: 384, 128>}, {pipeline_mode = #tpu.pipeline_mode<synchronous>, transform_indices = @transform_4, window_bounds = array<i64: 1, 128>}, {pipeline_mode = #tpu.pipeline_mode<synchronous>, transform_indices = @transform_5, window_bounds = array<i64: 128, 128>}, {pipeline_mode = #tpu.pipeline_mode<synchronous>, transform_indices = @transform_6, window_bounds = array<i64: 1, 128>}, {transform_indices = @transform_7, window_bounds = array<i64: 8, 128>}]} {
    %c0 = arith.constant 0 : index
    %c0_0 = arith.constant 0 : index
    %0 = vector.load %arg1[%c0, %c0_0] : memref<8x784xf32, #tpu.memory_space<vmem>>, vector<8x784xf32>
    %1 = arith.truncf %0 : vector<8x784xf32> to vector<8x784xbf16>
    %c0_1 = arith.constant 0 : index
    %c0_2 = arith.constant 0 : index
    %2 = vector.load %arg2[%c0_1, %c0_2] : memref<784x384xbf16, #tpu.memory_space<vmem>>, vector<784x384xbf16>
    %cst = arith.constant dense<0.000000e+00> : vector<8x384xf32>
    %3 = tpu.matmul %1, %2, %cst {dimension_numbers = #tpu.dot_dimension_numbers<[1], [0], [0], [1], [0, 0, 1, 1], [], []>} : vector<8x784xbf16>, vector<784x384xbf16>, vector<8x384xf32> -> vector<8x384xf32>
    %c0_3 = arith.constant 0 : index
    %c0_4 = arith.constant 0 : index
    %4 = vector.load %arg3[%c0_3, %c0_4] : memref<1x384xf32, #tpu.memory_space<vmem>>, vector<1x384xf32>
    %5 = vector.broadcast %4 : vector<1x384xf32> to vector<8x384xf32>
    %6 = arith.addf %3, %5 : vector<8x384xf32>
    %cst_5 = arith.constant 0.000000e+00 : f32
    %7 = vector.broadcast %cst_5 : f32 to vector<8x384xf32>
    %8 = arith.maximumf %6, %7 : vector<8x384xf32>
    %9 = arith.truncf %8 : vector<8x384xf32> to vector<8x384xbf16>
    %c0_6 = arith.constant 0 : index
    %c0_7 = arith.constant 0 : index
    %10 = vector.load %arg4[%c0_6, %c0_7] : memref<384x128xbf16, #tpu.memory_space<vmem>>, vector<384x128xbf16>
    %cst_8 = arith.constant dense<0.000000e+00> : vector<8x128xf32>
    %11 = tpu.matmul %9, %10, %cst_8 {dimension_numbers = #tpu.dot_dimension_numbers<[1], [0], [0], [1], [0, 0, 1, 1], [], []>} : vector<8x384xbf16>, vector<384x128xbf16>, vector<8x128xf32> -> vector<8x128xf32>
    %c0_9 = arith.constant 0 : index
    %c0_10 = arith.constant 0 : index
    %12 = vector.load %arg5[%c0_9, %c0_10] : memref<1x128xf32, #tpu.memory_space<vmem>>, vector<1x128xf32>
    %13 = vector.broadcast %12 : vector<1x128xf32> to vector<8x128xf32>
    %14 = arith.addf %11, %13 : vector<8x128xf32>
    %cst_11 = arith.constant 0.000000e+00 : f32
    %15 = vector.broadcast %cst_11 : f32 to vector<8x128xf32>
    %16 = arith.maximumf %14, %15 : vector<8x128xf32>
    %17 = arith.truncf %16 : vector<8x128xf32> to vector<8x128xbf16>
    %c0_12 = arith.constant 0 : index
    %c0_13 = arith.constant 0 : index
    %18 = vector.load %arg6[%c0_12, %c0_13] : memref<128x128xbf16, #tpu.memory_space<vmem>>, vector<128x128xbf16>
    %cst_14 = arith.constant dense<0.000000e+00> : vector<8x128xf32>
    %19 = tpu.matmul %17, %18, %cst_14 {dimension_numbers = #tpu.dot_dimension_numbers<[1], [0], [0], [1], [0, 0, 1, 1], [], []>} : vector<8x128xbf16>, vector<128x128xbf16>, vector<8x128xf32> -> vector<8x128xf32>
    %c0_15 = arith.constant 0 : index
    %c0_16 = arith.constant 0 : index
    %20 = vector.load %arg7[%c0_15, %c0_16] : memref<1x128xf32, #tpu.memory_space<vmem>>, vector<1x128xf32>
    %21 = vector.broadcast %20 : vector<1x128xf32> to vector<8x128xf32>
    %22 = arith.addf %19, %21 : vector<8x128xf32>
    %c0_17 = arith.constant 0 : index
    %c0_18 = arith.constant 0 : index
    %23 = vector.load %arg8[%c0_17, %c0_18] : memref<8x128xf32, #tpu.memory_space<vmem>>, vector<8x128xf32>
    tpu.vector_store %arg8[%c0_17, %c0_18], %22 {strides = array<i32>} : memref<8x128xf32, #tpu.memory_space<vmem>>, vector<8x128xf32>,
    return
  }
  func.func @transform_0(%arg0: i32) -> (i32, i32) {
    %c0_i32 = arith.constant 0 : i32
    %c0_i32_0 = arith.constant 0 : i32
    return %arg0, %c0_i32 : i32, i32
  }
  func.func @transform_1(%arg0: i32) -> (i32, i32) {
    %c0_i32 = arith.constant 0 : i32
    %c0_i32_0 = arith.constant 0 : i32
    %c0_i32_1 = arith.constant 0 : i32
    return %c0_i32, %c0_i32_0 : i32, i32
  }
  func.func @transform_2(%arg0: i32) -> (i32, i32) {
    %c0_i32 = arith.constant 0 : i32
    %c0_i32_0 = arith.constant 0 : i32
    %c0_i32_1 = arith.constant 0 : i32
    return %c0_i32, %c0_i32_0 : i32, i32
  }
  func.func @transform_3(%arg0: i32) -> (i32, i32) {
    %c0_i32 = arith.constant 0 : i32
    %c0_i32_0 = arith.constant 0 : i32
    %c0_i32_1 = arith.constant 0 : i32
    return %c0_i32, %c0_i32_0 : i32, i32
  }
  func.func @transform_4(%arg0: i32) -> (i32, i32) {
    %c0_i32 = arith.constant 0 : i32
    %c0_i32_0 = arith.constant 0 : i32
    %c0_i32_1 = arith.constant 0 : i32
    return %c0_i32, %c0_i32_0 : i32, i32
  }
  func.func @transform_5(%arg0: i32) -> (i32, i32) {
    %c0_i32 = arith.constant 0 : i32
    %c0_i32_0 = arith.constant 0 : i32
    %c0_i32_1 = arith.constant 0 : i32
    return %c0_i32, %c0_i32_0 : i32, i32
  }
  func.func @transform_6(%arg0: i32) -> (i32, i32) {
    %c0_i32 = arith.constant 0 : i32
    %c0_i32_0 = arith.constant 0 : i32
    %c0_i32_1 = arith.constant 0 : i32
    return %c0_i32, %c0_i32_0 : i32, i32
  }
  func.func @transform_7(%arg0: i32) -> (i32, i32) {
    %c0_i32 = arith.constant 0 : i32
    %c0_i32_0 = arith.constant 0 : i32
    return %arg0, %c0_i32 : i32, i32
  }
}

</mosaic_0001>

<bundles_post_ra>
// kernel: tpu_custom_call.1
= control target key start
LH: loop header
LB: loop body
LE: loop exit
PB: predicated region body
PF: predicated region fallthrough
CT: control target
= control target key end

     0   :  { %12 = vsyncpa [#allocation3], 0  ;;  %s2703_s0 = inlined_call_operand.hbm [shape: f32[8,784], index: 0, kind: input, shape index: {}]   ;;  %s2704_s1 = inlined_call_operand.hbm [shape: bf16[784,384], index: 1, kind: input, shape index: {}]   ;;  %s2705_s2 = inlined_call_operand.vmem [shape: f32[1,384], index: 2, kind: input, shape index: {}]   ;;  %s2706_s3 = inlined_call_operand.hbm [shape: bf16[384,128], index: 3, kind: input, shape index: {}]   ;;  %s2707_s4 = inlined_call_operand.vmem [shape: f32[1,128], index: 4, kind: input, shape index: {}]   ;;  %s2708_s5 = inlined_call_operand.hbm [shape: bf16[128,128], index: 5, kind: input, shape index: {}]   ;;  %s2709_s6 = inlined_call_operand.vmem [shape: f32[1,128], index: 6, kind: input, shape index: {}]   ;;  %s2710_s7 = inlined_call_operand.hbm [shape: f32[8,128], index: 7, kind: output, shape index: {}]  }
   0x1   :  { %13 = vsyncpa [#allocation6], 0 }
   0x2   :  { %14 = vsyncpa [#allocation9], 0 }
   0x3   :  { %15 = vsyncpa [#allocation4], 0  ;;  %s2545_s24 = smov [#allocation5]   ;;  %s2427_s28 = scalar_lea.hbm %s2704_s1, 18816 }
   0x4   :  { %s31_s25 = sshll.u32 %s2545_s24, 4  ;;  %p2428_p0 = scmp.ne.s32.totalorder %s2704_s1, %s2427_s28  ;;  %s32_s25 = int_to_ptr.vmem [resolvable:$true] %s31_s25 }
   0x5   :  { %p2431_p1 = scmp.lt.u32.totalorder %s2427_s28, %s2704_s1 }
   0x7   :  { %p2433_p2 = pnand %p2431_p1, %p2428_p0 }
   0x9   :  { %2436 = shalt.err (!%p2433_p2)
}
   0xa   :  { %s2437_s10 = scalar_lea.vmem %s32_s25, 18816  ;;  %p2442_p4 = scmp.lt.s32.totalorder %s32_s25, %s32_s25 }
   0xb   :  { %p2438_p3 = scmp.ne.s32.totalorder %s32_s25, %s2437_s10  ;;  %p2443_p5 = scmp.lt.s32.totalorder %s2437_s10, %s2437_s10 }
   0xd   :  { %p2444_p6 = por %p2443_p5, %p2442_p4 }
   0xf   :  { %p2445_p7 = pnand %p2444_p6, %p2438_p3 }
  0x11   :  { %2448 = shalt.err (!%p2445_p7)
}
  0x12   :  { %s2546_s11 = smov 192   ;;  %s2547_s12 = smov 12  }
  0x13   :  { %37 = dma.hbm_to_vmem [thread:$0]  %s2704_s1, 18816, %s32_s25, [#allocation6], %s2546_s11, %s2546_s11, %s2547_s12  }
  0x14   :  { %s2548_s15 = smov [#allocation2]   ;;  %s2549_s17 = smov [#allocation7]  }
  0x15   :  { %s22_s16 = sshll.u32 %s2548_s15, 4  ;;  %s45_s18 = sshll.u32 %s2549_s17, 4  ;;  %s23_s16 = int_to_ptr.vmem [resolvable:$true] %s22_s16  ;;  %s46_s18 = int_to_ptr.vmem [resolvable:$true] %s45_s18 }
  0x16   :  { %s2449_s21 = scalar_lea.hbm %s2703_s0, 896 }
  0x17   :  { %p2450_p8 = scmp.ne.s32.totalorder %s2703_s0, %s2449_s21  ;;  %p2453_p9 = scmp.lt.u32.totalorder %s2449_s21, %s2703_s0 }
  0x19   :  { %p2455_p10 = pnand %p2453_p9, %p2450_p8 }
  0x1b   :  { %2458 = shalt.err (!%p2455_p10)
}
  0x1c   :  { %s2459_s1 = scalar_lea.vmem %s23_s16, 896  ;;  %p2464_p12 = scmp.lt.s32.totalorder %s23_s16, %s23_s16 }
  0x1d   :  { %p2460_p11 = scmp.ne.s32.totalorder %s23_s16, %s2459_s1  ;;  %p2465_p13 = scmp.lt.s32.totalorder %s2459_s1, %s2459_s1 }
  0x1f   :  { %p2466_p0 = por %p2465_p13, %p2464_p12 }
  0x21   :  { %p2467_p1 = pnand %p2466_p0, %p2460_p11 }
  0x23   :  { %2470 = shalt.err (!%p2467_p1)
}
  0x24   :  { %25 = dma.hbm_to_vmem [thread:$0]  %s2703_s0, 896, %s23_s16, [#allocation3]  }
  0x25   :  { %s2471_s30 = scalar_lea.hbm %s2706_s3, 3072 }
  0x26   :  { %p2472_p2 = scmp.ne.s32.totalorder %s2706_s3, %s2471_s30  ;;  %p2475_p3 = scmp.lt.u32.totalorder %s2471_s30, %s2706_s3 }
  0x28   :  { %p2477_p4 = pnand %p2475_p3, %p2472_p2 }
  0x2a   :  { %2480 = shalt.err (!%p2477_p4)
}
  0x2b   :  { %s2481_s12 = scalar_lea.vmem %s46_s18, 3072  ;;  %p2486_p6 = scmp.lt.s32.totalorder %s46_s18, %s46_s18 }
  0x2c   :  { %p2482_p5 = scmp.ne.s32.totalorder %s46_s18, %s2481_s12  ;;  %p2487_p7 = scmp.lt.s32.totalorder %s2481_s12, %s2481_s12 }
  0x2e   :  { %p2488_p8 = por %p2487_p7, %p2486_p6 }
  0x30   :  { %p2489_p9 = pnand %p2488_p8, %p2482_p5 }
  0x32   :  { %2492 = shalt.err (!%p2489_p9)
}
  0x33   :  { %s2550_s0 = smov 64   ;;  %s2551_s13 = smov 4  }
  0x34   :  { %51 = dma.hbm_to_vmem [thread:$0]  %s2706_s3, 3072, %s46_s18, [#allocation6], %s2550_s0, %s2550_s0, %s2551_s13  }
  0x35   :  { %s2552_s16 = smov [#allocation8]   ;;  %s2493_s21 = scalar_lea.hbm %s2708_s5, 1024 }
  0x36   :  { %s59_s17 = sshll.u32 %s2552_s16, 4  ;;  %p2494_p10 = scmp.ne.s32.totalorder %s2708_s5, %s2493_s21  ;;  %s60_s17 = int_to_ptr.vmem [resolvable:$true] %s59_s17 }
  0x37   :  { %p2497_p11 = scmp.lt.u32.totalorder %s2493_s21, %s2708_s5 }
  0x39   :  { %p2499_p12 = pnand %p2497_p11, %p2494_p10 }
  0x3b   :  { %2502 = shalt.err (!%p2499_p12)
}
  0x3c   :  { %s2503_s1 = scalar_lea.vmem %s60_s17, 1024  ;;  %p2508_p0 = scmp.lt.s32.totalorder %s60_s17, %s60_s17 }
  0x3d   :  { %p2504_p13 = scmp.ne.s32.totalorder %s60_s17, %s2503_s1  ;;  %p2509_p1 = scmp.lt.s32.totalorder %s2503_s1, %s2503_s1 }
  0x3f   :  { %p2510_p2 = por %p2509_p1, %p2508_p0 }
  0x41   :  { %p2511_p3 = pnand %p2510_p2, %p2504_p13 }
  0x43   :  { %2514 = shalt.err (!%p2511_p3)
}
  0x44   :  { %65 = dma.hbm_to_vmem [thread:$0]  %s2708_s5, 1024, %s60_s17, [#allocation9], %s2550_s0, %s2550_s0, %s2551_s13  }
  0x45   :  { %2537 = dma.done.wait [#allocation3], 896  }
  0x46   :  { %2538 = vsyncadd [#allocation3], 4294966400 }
  0x47   :  { %2539 = dma.done.wait [#allocation6], 21888  }
  0x48   :  { %2540 = vsyncadd [#allocation6], 4294945408 }
  0x49   :  { %2541 = dma.done.wait [#allocation9], 1024  }
  0x4a   :  { %2542 = vsyncadd [#allocation9], 4294966272  ;;  %v2199_v0 = vld [vmem:[#allocation5 + $0x4] ss:$12 sps:$4 sm:$0xff]   ;;  %v2201_v1 = vld [vmem:[#allocation5] ss:$12 sps:$4 sm:$0xff]  }
  0x4b   :  { %1096 = vmatprep.subr.bf16.mxu0 %v2199_v0  ;;  %v2202_v2 = vld [vmem:[#allocation5 + $0x1c] ss:$12 sps:$4 sm:$0xff]   ;;  %v2204_v3 = vld [vmem:[#allocation5 + $0x18] ss:$12 sps:$4 sm:$0xff]   ;;  %v2205_v4 = vld [vmem:[#allocation5 + $0x34] ss:$12 sps:$4 sm:$0xff]  }
  0x4c   :  { %1097 = vmatpush1.bf16.msra.mxu0 %v2201_v1  ;;  %v2207_v5 = vld [vmem:[#allocation5 + $0x30] ss:$12 sps:$4 sm:$0xff]   ;;  %v2208_v6 = vld [vmem:[#allocation5 + $0x4c] ss:$12 sps:$4 sm:$0xff]   ;;  %v2210_v7 = vld [vmem:[#allocation5 + $0x48] ss:$12 sps:$4 sm:$0xff]  }
  0x4d   :  { %1098 = vmatprep.subr.bf16.mxu0 %v2202_v2  ;;  %v2211_v8 = vld [vmem:[#allocation5 + $0x64] ss:$12 sps:$4 sm:$0xff]   ;;  %v2213_v9 = vld [vmem:[#allocation5 + $0x60] ss:$12 sps:$4 sm:$0xff]   ;;  %v2214_v10 = vld [vmem:[#allocation5 + $0x7c] ss:$12 sps:$4 sm:$0xff]  }
  0x4e   :  { %v2216_v11 = vld [vmem:[#allocation5 + $0x78] ss:$12 sps:$4 sm:$0xff]   ;;  %v2217_v12 = vld [vmem:[#allocation5 + $0x94] ss:$12 sps:$4 sm:$0xff]   ;;  %v2219_v15 = vld [vmem:[#allocation5 + $0x90] ss:$12 sps:$4 sm:$0xff]  }
  0x4f   :  { %v82_v13 = vld [vmem:[#allocation2 + $0x8] sm:$0xff]  ;;  %v2220_v16 = vld [vmem:[#allocation5 + $0xac] ss:$12 sps:$4 sm:$0xff]   ;;  %v2226_v24 = vld [vmem:[#allocation5 + $0xdc] ss:$12 sps:$4 sm:$0xff]   ;;  %vm1092_vm0 = vcmask 130048  }
  0x50   :  { %1099 = vmatpush1.bf16.msra.mxu0 %v2204_v3  ;;  %v89_v14 = vpack.c.bf16 %v82_v13, %v82_v13  ;;  %v2253_v17 = vld [vmem:[#allocation5 + $0xc8] ss:$12 sps:$4 sm:$0xff]   ;;  %v2223_v20 = vld [vmem:[#allocation5 + $0xc4] ss:$12 sps:$4 sm:$0xff]   ;;  %v2258_v21 = vld [vmem:[#allocation5 + $0xe0] ss:$12 sps:$4 sm:$0xff]  }
  0x51   :  { %1100 = vmatprep.subr.bf16.mxu0 %v2205_v4  ;;  %v2254_v18 = vld [vmem:[#allocation5 + $0x8] ss:$12 sps:$4 sm:$0xff]   ;;  %2019 = vmatprep.subr.bf16.mxu1 %v2253_v17  ;;  %v2259_v22 = vld [vmem:[#allocation5 + $0x20] ss:$12 sps:$4 sm:$0xff]   ;;  %v2263_v25 = vld [vmem:[#allocation5 + $0xf8] ss:$12 sps:$4 sm:$0xff]  }
  0x52   :  { %1128 = vmatprep.mubr.bf16.mxu0 %v89_v14  ;;  %1292 = vmatprep.mubr.bf16.mxu1 %v89_v14  ;;  %v2222_v19 = vld [vmem:[#allocation5 + $0xa8] ss:$12 sps:$4 sm:$0xff]   ;;  %v2225_v23 = vld [vmem:[#allocation5 + $0xc0] ss:$12 sps:$4 sm:$0xff]   ;;  %v2264_v26 = vld [vmem:[#allocation5 + $0x38] ss:$12 sps:$4 sm:$0xff]  }
  0x53   :  { %2020 = vmatpush3.bf16.msra.mxu1 %v2254_v18  ;;  %v2228_v27 = vld [vmem:[#allocation5 + $0xd8] ss:$12 sps:$4 sm:$0xff]   ;;  %v2229_v28 = vld [vmem:[#allocation5 + $0xf4] ss:$12 sps:$4 sm:$0xff]   ;;  %v2268_v29 = vld [vmem:[#allocation5 + $0x110] ss:$12 sps:$4 sm:$0xff]  }
  0x54   :  { %1101 = vmatpush1.bf16.msra.mxu0 %v2207_v5  ;;  %2021 = vmatprep.subr.bf16.mxu1 %v2258_v21  ;;  %v2269_v30 = vld [vmem:[#allocation5 + $0x50] ss:$12 sps:$4 sm:$0xff]   ;;  %v2273_v32 = vld [vmem:[#allocation5 + $0x128] ss:$12 sps:$4 sm:$0xff]   ;;  %v2232_v33 = vld [vmem:[#allocation5 + $0x10c] ss:$12 sps:$4 sm:$0xff]  }
  0x55   :  { %1102 = vmatprep.subr.bf16.mxu0 %v2208_v6  ;;  %v2231_v31 = vld [vmem:[#allocation5 + $0xf0] ss:$12 sps:$4 sm:$0xff]   ;;  %v2274_v34 = vld [vmem:[#allocation5 + $0x68] ss:$12 sps:$4 sm:$0xff]   ;;  %v2278_v35 = vld [vmem:[#allocation5 + $0x140] ss:$12 sps:$4 sm:$0xff]  }
  0x56   :  { %v2234_v36 = vld [vmem:[#allocation5 + $0x108] ss:$12 sps:$4 sm:$0xff]   ;;  %v2235_v37 = vld [vmem:[#allocation5 + $0x124] ss:$12 sps:$4 sm:$0xff]   ;;  %v2279_v38 = vld [vmem:[#allocation5 + $0x80] ss:$12 sps:$4 sm:$0xff]  }
  0x57   :  { %2022 = vmatpush3.bf16.msra.mxu1 %v2259_v22  ;;  %v2283_v39 = vld [vmem:[#allocation5 + $0x158] ss:$12 sps:$4 sm:$0xff]   ;;  %v2237_v40 = vld [vmem:[#allocation5 + $0x120] ss:$12 sps:$4 sm:$0xff]   ;;  %v2238_v41 = vld [vmem:[#allocation5 + $0x13c] ss:$12 sps:$4 sm:$0xff]  }
  0x58   :  { %1103 = vmatpush1.bf16.msra.mxu0 %v2210_v7  ;;  %2023 = vmatprep.subr.bf16.mxu1 %v2263_v25  ;;  %v2284_v42 = vld [vmem:[#allocation5 + $0x98] ss:$12 sps:$4 sm:$0xff]   ;;  %v2288_v43 = vld [vmem:[#allocation5 + $0x170] ss:$12 sps:$4 sm:$0xff]   ;;  %v2241_v45 = vld [vmem:[#allocation5 + $0x154] ss:$12 sps:$4 sm:$0xff]  }
  0x59   :  { %1104 = vmatprep.subr.bf16.mxu0 %v2211_v8  ;;  %v2240_v44 = vld [vmem:[#allocation5 + $0x138] ss:$12 sps:$4 sm:$0xff]   ;;  %v2289_v46 = vld [vmem:[#allocation5 + $0xb0] ss:$12 sps:$4 sm:$0xff]   ;;  %v2293_v47 = vld [vmem:[#allocation5 + $0x248] ss:$12 sps:$4 sm:$0xff]  }
  0x5a   :  { %v2243_v48 = vld [vmem:[#allocation5 + $0x150] ss:$12 sps:$4 sm:$0xff]   ;;  %v81_v49 = vld [vmem:[#allocation2] sm:$0xff]  ;;  %v2303_v57 = vld [vmem:[#allocation5 + $0x278] ss:$12 sps:$4 sm:$0xff]   ;;  %vm2554_vm1 = vmmov 0  }
  0x5b   :  { %2024 = vmatpush3.bf16.msra.mxu1 %v2264_v26  ;;  %v2244_v50 = vld [vmem:[#allocation5 + $0x16c] ss:$12 sps:$4 sm:$0xff]   ;;  %v2294_v51 = vld [vmem:[#allocation5 + $0x188] ss:$12 sps:$4 sm:$0xff]   ;;  %v88_v52 = vpack.c.bf16 %v81_v49, %v81_v49  ;;  %v2249_v55 = vld [vmem:[#allocation5 + $0x184] ss:$12 sps:$4 sm:$0xff]  }
  0x5c   :  { %1105 = vmatpush1.bf16.msra.mxu0 %v2213_v9  ;;  %2025 = vmatprep.subr.bf16.mxu1 %v2268_v29  ;;  %v2298_v53 = vld [vmem:[#allocation5 + $0x260] ss:$12 sps:$4 sm:$0xff]   ;;  %v2246_v54 = vld [vmem:[#allocation5 + $0x168] ss:$12 sps:$4 sm:$0xff]   ;;  %v2304_v60 = vld [vmem:[#allocation5 + $0x1b8] ss:$12 sps:$4 sm:$0xff]  }
  0x5d   :  { %1106 = vmatprep.subr.bf16.mxu0 %v2214_v10  ;;  %v2299_v56 = vld [vmem:[#allocation5 + $0x1a0] ss:$12 sps:$4 sm:$0xff]   ;;  %v2252_v59 = vld [vmem:[#allocation5 + $0x19c] ss:$12 sps:$4 sm:$0xff]   ;;  %v2250_v62 = vld [vmem:[#allocation5 + $0x198] ss:$12 sps:$4 sm:$0xff]  }
  0x5e   :  { %v2247_v58 = vld [vmem:[#allocation5 + $0x180] ss:$12 sps:$4 sm:$0xff]   ;;  %v2308_v61 = vld [vmem:[#allocation5 + $0x290] ss:$12 sps:$4 sm:$0xff]   ;;  %v2313_v1 = vld [vmem:[#allocation5 + $0x2a8] ss:$12 sps:$4 sm:$0xff]  }
  0x5f   :  { %2026 = vmatpush3.bf16.msra.mxu1 %v2269_v30  ;;  %v2257_v63 = vld [vmem:[#allocation5 + $0x1b4] ss:$12 sps:$4 sm:$0xff]   ;;  %v2309_v0 = vld [vmem:[#allocation5 + $0x1d0] ss:$12 sps:$4 sm:$0xff]   ;;  %v2262_v3 = vld [vmem:[#allocation5 + $0x1cc] ss:$12 sps:$4 sm:$0xff]  }
  0x60   :  { %1107 = vmatpush1.bf16.msra.mxu0 %v2216_v11  ;;  %2027 = vmatprep.subr.bf16.mxu1 %v2273_v32  ;;  %v2255_v2 = vld [vmem:[#allocation5 + $0x1b0] ss:$12 sps:$4 sm:$0xff]   ;;  %v2314_v4 = vld [vmem:[#allocation5 + $0x1e8] ss:$12 sps:$4 sm:$0xff]   ;;  %v2318_v5 = vld [vmem:[#allocation5 + $0x2c0] ss:$12 sps:$4 sm:$0xff]  }
  0x61   :  { %1108 = vmatprep.subr.bf16.mxu0 %v2217_v12  ;;  %v84_v6 = vld [vmem:[#allocation2 + $0x18] sm:$0xff]  ;;  %v2260_v7 = vld [vmem:[#allocation5 + $0x1c8] ss:$12 sps:$4 sm:$0xff]   ;;  %v2329_v18 = vld [vmem:[#allocation5 + $0x230] ss:$12 sps:$4 sm:$0xff]   ;;  %s2556_s30 = smov [#allocation10]  }
  0x62   :  { %v91_v8 = vpack.c.bf16 %v84_v6, %v84_v6  ;;  %v2267_v9 = vld [vmem:[#allocation5 + $0x1e4] ss:$12 sps:$4 sm:$0xff]   ;;  %v2319_v10 = vld [vmem:[#allocation5 + $0x200] ss:$12 sps:$4 sm:$0xff]   ;;  %v2272_v13 = vld [vmem:[#allocation5 + $0x1fc] ss:$12 sps:$4 sm:$0xff]  }
  0x63   :  { %2028 = vmatpush3.bf16.msra.mxu1 %v2274_v34  ;;  %v2323_v11 = vld [vmem:[#allocation5 + $0x2d8] ss:$12 sps:$4 sm:$0xff]   ;;  %v2265_v12 = vld [vmem:[#allocation5 + $0x1e0] ss:$12 sps:$4 sm:$0xff]   ;;  %v2275_v21 = vld [vmem:[#allocation5 + $0x210] ss:$12 sps:$4 sm:$0xff]  }
  0x64   :  { %1109 = vmatpush1.bf16.msra.mxu0 %v2219_v15  ;;  %2029 = vmatprep.subr.bf16.mxu1 %v2278_v35  ;;  %v2324_v14 = vld [vmem:[#allocation5 + $0x218] ss:$12 sps:$4 sm:$0xff]   ;;  %v2328_v15 = vld [vmem:[#allocation5 + $0x2f0] ss:$12 sps:$4 sm:$0xff]   ;;  %v2277_v17 = vld [vmem:[#allocation5 + $0x214] ss:$12 sps:$4 sm:$0xff]  }
  0x65   :  { %1110 = vmatprep.subr.bf16.mxu0 %v2220_v16  ;;  %v2270_v16 = vld [vmem:[#allocation5 + $0x1f8] ss:$12 sps:$4 sm:$0xff]   ;;  %v2338_v25 = vld [vmem:[#allocation5 + $0x3e0] ss:$12 sps:$4 sm:$0xff]   ;;  %v2280_v26 = vld [vmem:[#allocation5 + $0x228] ss:$12 sps:$4 sm:$0xff]  }
  0x66   :  { %v2282_v22 = vld [vmem:[#allocation5 + $0x22c] ss:$12 sps:$4 sm:$0xff]   ;;  %v2297_v35 = vld [vmem:[#allocation5 + $0x274] ss:$12 sps:$4 sm:$0xff]   ;;  %v2312_v49 = vld [vmem:[#allocation5 + $0x2bc] ss:$12 sps:$4 sm:$0xff]  }
  0x67   :  { %2030 = vmatpush3.bf16.msra.mxu1 %v2279_v38  ;;  %v2343_v29 = vld [vmem:[#allocation5 + $0x3f8] ss:$12 sps:$4 sm:$0xff]   ;;  %v2285_v30 = vld [vmem:[#allocation5 + $0x240] ss:$12 sps:$4 sm:$0xff]   ;;  %v2295_v38 = vld [vmem:[#allocation5 + $0x270] ss:$12 sps:$4 sm:$0xff]  }
  0x68   :  { %1111 = vmatpush1.bf16.msra.mxu0 %v2222_v19  ;;  %2031 = vmatprep.subr.bf16.mxu1 %v2283_v39  ;;  %v2333_v19 = vld [vmem:[#allocation5 + $0x3c8] ss:$12 sps:$4 sm:$0xff]   ;;  %v2344_v32 = vld [vmem:[#allocation5 + $0x338] ss:$12 sps:$4 sm:$0xff]   ;;  %s1825_s8 = sshll.u32 %s2556_s30, 4  ;;  %s1826_s8 = int_to_ptr.vmem [resolvable:$true] %s1825_s8 }
  0x69   :  { %1112 = vmatprep.subr.bf16.mxu0 %v2223_v20  ;;  %v83_v20 = vld [vmem:[#allocation2 + $0x10] sm:$0xff]  ;;  %p2520_p5 = scmp.lt.s32.totalorder %s1826_s8, %s1826_s8 }
  0x6a   :  { %v2290_v34 = vld [vmem:[#allocation5 + $0x258] ss:$12 sps:$4 sm:$0xff]  }
  0x6b   :  { %2032 = vmatpush3.bf16.msra.mxu1 %v2284_v42  ;;  %v2302_v39 = vld [vmem:[#allocation5 + $0x28c] ss:$12 sps:$4 sm:$0xff]   ;;  %v86_v42 = vld [vmem:[#allocation2 + $0x28] sm:$0xff] }
  0x6c   :  { %1113 = vmatpush1.bf16.msra.mxu0 %v2225_v23  ;;  %2033 = vmatprep.subr.bf16.mxu1 %v2288_v43  ;;  %v2334_v23 = vld [vmem:[#allocation5 + $0x308] ss:$12 sps:$4 sm:$0xff]   ;;  %v2342_v6 = vld [vmem:[#allocation5 + $0x34c] ss:$12 sps:$4 sm:$0xff]  }
  0x6d   :  { %1114 = vmatprep.subr.bf16.mxu0 %v2226_v24  ;;  %v2645_v24 = vpack.c.bf16 %v83_v20, %v83_v20  ;;  %v2300_v43 = vld [vmem:[#allocation5 + $0x288] ss:$12 sps:$4 sm:$0xff]  }
  0x6e   :  { %v2375_v20 = vld [vmem:[#allocation5 + $0x3f4] ss:$12 sps:$4 sm:$0xff]  }
  0x6f   :  { %2034 = vmatpush3.bf16.msra.mxu1 %v2289_v46  ;;  %v2359_v46 = vld [vmem:[#allocation5 + $0x380] ss:$12 sps:$4 sm:$0xff]  }
  0x70   :  { %1115 = vmatpush1.bf16.msra.mxu0 %v2228_v27  ;;  %2041 = vmatprep.subr.bf16.mxu1 %v2293_v47  ;;  %v2287_v27 = vld [vmem:[#allocation5 + $0x244] ss:$12 sps:$4 sm:$0xff]  }
  0x71   :  { %1116 = vmatprep.subr.bf16.mxu0 %v2229_v28  ;;  %v2339_v28 = vld [vmem:[#allocation5 + $0x320] ss:$12 sps:$4 sm:$0xff]   ;;  %v2363_v47 = vld [vmem:[#allocation5 + $0x458] ss:$12 sps:$4 sm:$0xff]  }
  0x72   :  { %1293 = vmatmul.mubr.bf16.vlgmr.msra.gmra.mrb[0].mxu1 %v88_v52 }
  0x73   :  { %2042 = vmatpush3.bf16.msra.mxu1 %v2294_v51  ;;  %1332 = vmatprep.mubr.bf16.mxu1 %v91_v8  ;;  %v2368_v51 = vld [vmem:[#allocation5 + $0x470] ss:$12 sps:$4 sm:$0xff]  }
  0x74   :  { %1117 = vmatpush1.bf16.msra.mxu0 %v2231_v31  ;;  %2043 = vmatprep.subr.bf16.mxu1 %v2298_v53  ;;  %v2292_v31 = vld [vmem:[#allocation5 + $0x25c] ss:$12 sps:$4 sm:$0xff]   ;;  %v2317_v53 = vld [vmem:[#allocation5 + $0x2d4] ss:$12 sps:$4 sm:$0xff]  }
  0x75   :  { %1118 = vmatprep.subr.bf16.mxu0 %v2232_v33  ;;  %v2348_v33 = vld [vmem:[#allocation5 + $0x410] ss:$12 sps:$4 sm:$0xff]  }
  0x77   :  { %2044 = vmatpush3.bf16.msra.mxu1 %v2299_v56  ;;  %v2315_v56 = vld [vmem:[#allocation5 + $0x2d0] ss:$12 sps:$4 sm:$0xff]  }
  0x78   :  { %1119 = vmatpush1.bf16.msra.mxu0 %v2234_v36  ;;  %2045 = vmatprep.subr.bf16.mxu1 %v2303_v57  ;;  %v2349_v36 = vld [vmem:[#allocation5 + $0x350] ss:$12 sps:$4 sm:$0xff]   ;;  %v2322_v57 = vld [vmem:[#allocation5 + $0x2ec] ss:$12 sps:$4 sm:$0xff]  }
  0x79   :  { %1120 = vmatprep.subr.bf16.mxu0 %v2235_v37  ;;  %v2353_v37 = vld [vmem:[#allocation5 + $0x428] ss:$12 sps:$4 sm:$0xff]  }
  0x7b   :  { %2046 = vmatpush3.bf16.msra.mxu1 %v2304_v60  ;;  %v2320_v60 = vld [vmem:[#allocation5 + $0x2e8] ss:$12 sps:$4 sm:$0xff]  }
  0x7c   :  { %1121 = vmatpush1.bf16.msra.mxu0 %v2237_v40  ;;  %2047 = vmatprep.subr.bf16.mxu1 %v2308_v61  ;;  %v2354_v40 = vld [vmem:[#allocation5 + $0x368] ss:$12 sps:$4 sm:$0xff]   ;;  %v2553_v61 = vmov 0.0  }
  0x7d   :  { %1122 = vmatprep.subr.bf16.mxu0 %v2238_v41  ;;  %v2358_v41 = vld [vmem:[#allocation5 + $0x440] ss:$12 sps:$4 sm:$0xff]  }
  0x7f   :  { %2048 = vmatpush3.bf16.msra.mxu1 %v2309_v0  ;;  %v2325_v0 = vld [vmem:[#allocation5 + $0x300] ss:$12 sps:$4 sm:$0xff]  }
  0x80   :  { %1123 = vmatpush1.bf16.msra.mxu0 %v2240_v44  ;;  %2049 = vmatprep.subr.bf16.mxu1 %v2313_v1  ;;  %v93_v44 = vpack.c.bf16 %v86_v42, %v86_v42  ;;  %v2332_v1 = vld [vmem:[#allocation5 + $0x31c] ss:$12 sps:$4 sm:$0xff]   ;;  %v2402_v42 = vld [vmem:[#allocation7 + $0x18] sm:$0xff]  }
  0x81   :  { %1124 = vmatprep.subr.bf16.mxu0 %v2241_v45  ;;  %v2307_v45 = vld [vmem:[#allocation5 + $0x2a4] ss:$12 sps:$4 sm:$0xff]  }
  0x83   :  { %2050 = vmatpush3.bf16.msra.mxu1 %v2314_v4  ;;  %v2337_v4 = vld [vmem:[#allocation5 + $0x334] ss:$12 sps:$4 sm:$0xff]  }
  0x84   :  { %1125 = vmatpush1.bf16.msra.mxu0 %v2243_v48  ;;  %2051 = vmatprep.subr.bf16.mxu1 %v2318_v5  ;;  %v2305_v48 = vld [vmem:[#allocation5 + $0x2a0] ss:$12 sps:$4 sm:$0xff]   ;;  %v2335_v5 = vld [vmem:[#allocation5 + $0x330] ss:$12 sps:$4 sm:$0xff]  }
  0x85   :  { %1126 = vmatprep.subr.bf16.mxu0 %v2244_v50  ;;  %v2364_v50 = vld [vmem:[#allocation5 + $0x398] ss:$12 sps:$4 sm:$0xff]  }
  0x87   :  { %2052 = vmatpush3.bf16.msra.mxu1 %v2319_v10  ;;  %v2352_v10 = vld [vmem:[#allocation5 + $0x37c] ss:$12 sps:$4 sm:$0xff]  }
  0x88   :  { %1127 = vmatpush1.bf16.msra.mxu0 %v2246_v54  ;;  %2053 = vmatprep.subr.bf16.mxu1 %v2323_v11  ;;  %v2369_v54 = vld [vmem:[#allocation5 + $0x3b0] ss:$12 sps:$4 sm:$0xff]   ;;  %v2350_v11 = vld [vmem:[#allocation5 + $0x378] ss:$12 sps:$4 sm:$0xff]  }
  0x89   :  { %1137 = vmatprep.subr.bf16.mxu0 %v2249_v55  ;;  %v85_v55 = vld [vmem:[#allocation2 + $0x20] sm:$0xff] }
  0x8b   :  { %1129 = vmatmul.mubr.bf16.vlgmr.msra.gmra.mrb[0].mxu0 %v88_v52  ;;  %2054 = vmatpush3.bf16.msra.mxu1 %v2324_v14  ;;  %v2310_v52 = vld [vmem:[#allocation5 + $0x2b8] ss:$12 sps:$4 sm:$0xff]  }
  0x8c   :  { %1138 = vmatpush1.bf16.msra.mxu0 %v2247_v58  ;;  %1169 = vmatprep.mubr.bf16.mxu0 %v91_v8  ;;  %v2376_v58 = vld [vmem:[#allocation5 + $0x488] ss:$12 sps:$4 sm:$0xff]   ;;  %v2347_v8 = vld [vmem:[#allocation5 + $0x364] ss:$12 sps:$4 sm:$0xff]   ;;  %v2362_v14 = vld [vmem:[#allocation5 + $0x3ac] ss:$12 sps:$4 sm:$0xff]  }
  0x8d   :  { %1139 = vmatprep.subr.bf16.mxu0 %v2252_v59  ;;  %2055 = vmatprep.subr.bf16.mxu1 %v2328_v15  ;;  %v2648_v59 = vpack.c.bf16 %v85_v55, %v85_v55  ;;  %v2360_v15 = vld [vmem:[#allocation5 + $0x3a8] ss:$12 sps:$4 sm:$0xff]  }
  0x8f   :  { %2056 = vmatpush3.bf16.msra.mxu1 %v2329_v18  ;;  %v2372_v18 = vld [vmem:[#allocation5 + $0x3dc] ss:$12 sps:$4 sm:$0xff]  }
  0x90   :  { %1140 = vmatpush1.bf16.msra.mxu0 %v2250_v62  ;;  %2063 = vmatprep.subr.bf16.mxu1 %v2333_v19  ;;  %v2327_v62 = vld [vmem:[#allocation5 + $0x304] ss:$12 sps:$4 sm:$0xff]  }
  0x91   :  { %1141 = vmatprep.subr.bf16.mxu0 %v2257_v63  ;;  %v87_v63 = vld [vmem:[#allocation2 + $0x30] sm:$0xff] }
  0x92   :  { %1333 = vmatmul.mubr.bf16.vlgmr.msra.gmra.mrb[4].mxu1 %v2645_v24  ;;  %v2370_v19 = vld [vmem:[#allocation5 + $0x3d8] ss:$12 sps:$4 sm:$0xff]  }
  0x93   :  { %2064 = vmatpush3.bf16.msra.mxu1 %v2334_v23  ;;  %1372 = vmatprep.mubr.bf16.mxu1 %v93_v44  ;;  %v2377_v23 = vld [vmem:[#allocation5 + $0x408] ss:$12 sps:$4 sm:$0xff]  }
  0x94   :  { %1142 = vmatpush1.bf16.msra.mxu0 %v2255_v2  ;;  %2065 = vmatprep.subr.bf16.mxu1 %v2338_v25  ;;  %v2654_v2 = vpack.c.bf16 %v87_v63, %v87_v63  ;;  %v2380_v25 = vld [vmem:[#allocation5 + $0x420] ss:$12 sps:$4 sm:$0xff]  }
  0x95   :  { %1143 = vmatprep.subr.bf16.mxu0 %v2262_v3  ;;  %v2330_v3 = vld [vmem:[#allocation5 + $0x318] ss:$12 sps:$4 sm:$0xff]  }
  0x97   :  { %2066 = vmatpush3.bf16.msra.mxu1 %v2339_v28  ;;  %v2388_v28 = vld [vmem:[#allocation5 + $0x454] ss:$12 sps:$4 sm:$0xff]  }
  0x98   :  { %1144 = vmatpush1.bf16.msra.mxu0 %v2260_v7  ;;  %2067 = vmatprep.subr.bf16.mxu1 %v2343_v29  ;;  %v2340_v7 = vld [vmem:[#allocation5 + $0x348] ss:$12 sps:$4 sm:$0xff]   ;;  %v2386_v29 = vld [vmem:[#allocation5 + $0x450] ss:$12 sps:$4 sm:$0xff]  }
  0x99   :  { %1145 = vmatprep.subr.bf16.mxu0 %v2267_v9  ;;  %v2345_v9 = vld [vmem:[#allocation5 + $0x360] ss:$12 sps:$4 sm:$0xff]  }
  0x9b   :  { %2068 = vmatpush3.bf16.msra.mxu1 %v2344_v32  ;;  %v2394_v32 = vld [vmem:[#allocation5 + $0x484] ss:$12 sps:$4 sm:$0xff]  }
  0x9c   :  { %1146 = vmatpush1.bf16.msra.mxu0 %v2265_v12  ;;  %2069 = vmatprep.subr.bf16.mxu1 %v2348_v33  ;;  %v2357_v12 = vld [vmem:[#allocation5 + $0x394] ss:$12 sps:$4 sm:$0xff]  }
  0x9d   :  { %1147 = vmatprep.subr.bf16.mxu0 %v2272_v13  ;;  %v2355_v13 = vld [vmem:[#allocation5 + $0x390] ss:$12 sps:$4 sm:$0xff]   ;;  %v2392_v33 = vld [vmem:[#allocation5 + $0x480] ss:$12 sps:$4 sm:$0xff]  }
  0x9f   :  { %2070 = vmatpush3.bf16.msra.mxu1 %v2349_v36  ;;  %v2396_v36 = vld [vmem:[#allocation7] sm:$0xff]  }
  0xa0   :  { %1148 = vmatpush1.bf16.msra.mxu0 %v2270_v16  ;;  %2071 = vmatprep.subr.bf16.mxu1 %v2353_v37  ;;  %v2367_v16 = vld [vmem:[#allocation5 + $0x3c4] ss:$12 sps:$4 sm:$0xff]  }
  0xa1   :  { %1149 = vmatprep.subr.bf16.mxu0 %v2277_v17  ;;  %v2365_v17 = vld [vmem:[#allocation5 + $0x3c0] ss:$12 sps:$4 sm:$0xff]  }
  0xa2   :  { %v2397_v37 = vld [vmem:[#allocation7 + $0x48] sm:$0xff]  }
  0xa3   :  { %2072 = vmatpush3.bf16.msra.mxu1 %v2354_v40  ;;  %v2400_v40 = vld [vmem:[#allocation7 + $0x10] sm:$0xff]  }
  0xa4   :  { %1150 = vmatpush1.bf16.msra.mxu0 %v2275_v21  ;;  %2073 = vmatprep.subr.bf16.mxu1 %v2358_v41  ;;  %v2373_v21 = vld [vmem:[#allocation5 + $0x3f0] ss:$12 sps:$4 sm:$0xff]  }
  0xa5   :  { %1151 = vmatprep.subr.bf16.mxu0 %v2282_v22  ;;  %v2379_v22 = vld [vmem:[#allocation5 + $0x40c] ss:$12 sps:$4 sm:$0xff]   ;;  %v2401_v41 = vld [vmem:[#allocation7 + $0x58] sm:$0xff]  }
  0xa7   :  { %2074 = vmatpush3.bf16.msra.mxu1 %v2359_v46  ;;  %v2406_v46 = vld [vmem:[#allocation7 + $0x28] sm:$0xff]  }
  0xa8   :  { %1152 = vmatpush1.bf16.msra.mxu0 %v2280_v26  ;;  %2075 = vmatprep.subr.bf16.mxu1 %v2363_v47  ;;  %v2385_v26 = vld [vmem:[#allocation5 + $0x43c] ss:$12 sps:$4 sm:$0xff]  }
  0xa9   :  { %1153 = vmatprep.subr.bf16.mxu0 %v2287_v27  ;;  %v2383_v27 = vld [vmem:[#allocation5 + $0x438] ss:$12 sps:$4 sm:$0xff]  }
  0xab   :  { %2076 = vmatpush3.bf16.msra.mxu1 %v2364_v50 }
  0xac   :  { %1154 = vmatpush1.bf16.msra.mxu0 %v2285_v30  ;;  %2077 = vmatprep.subr.bf16.mxu1 %v2368_v51  ;;  %v2391_v30 = vld [vmem:[#allocation5 + $0x46c] ss:$12 sps:$4 sm:$0xff]  }
  0xad   :  { %1155 = vmatprep.subr.bf16.mxu0 %v2292_v31  ;;  %v2389_v31 = vld [vmem:[#allocation5 + $0x468] ss:$12 sps:$4 sm:$0xff]  }
  0xaf   :  { %2078 = vmatpush3.bf16.msra.mxu1 %v2369_v54  ;;  %v2408_v54 = vld [vmem:[#allocation7 + $0x30] sm:$0xff]  }
  0xb0   :  { %1156 = vmatpush1.bf16.msra.mxu0 %v2290_v34  ;;  %2127 = vmatprep.subr.bf16.mxu1 %v2553_v61  ;;  %v2555_v34 = vmov 0  }
  0xb1   :  { %1157 = vmatprep.subr.bf16.mxu0 %v2297_v35  ;;  %v2395_v35 = vld [vmem:[#allocation7 + $0x40] sm:$0xff]  }
  0xb2   :  { %1373 = vmatmul.mubr.bf16.vlgmr.msra.gmra.mrb[8].mxu1 %v2648_v59 }
  0xb3   :  { %2128 = vmatpush3.bf16.msra.mxu1 %v2376_v58  ;;  %2129 = vmatprep.mubr.msk.bf16.mxu1 %vm2554_vm1, %v2553_v61 }
  0xb4   :  { %1158 = vmatpush1.bf16.msra.mxu0 %v2295_v38  ;;  %2087 = vmatprep.subr.bf16.mxu1 %v2395_v35  ;;  %v2398_v38 = vld [vmem:[#allocation7 + $0x8] sm:$0xff]  }
  0xb5   :  { %1159 = vmatprep.subr.bf16.mxu0 %v2302_v39  ;;  %v2399_v39 = vld [vmem:[#allocation7 + $0x50] sm:$0xff]   ;;  %v2416_v35 = vld [vmem:[#allocation7 + $0xa8] sm:$0xff]  }
  0xb8   :  { %1160 = vmatpush1.bf16.msra.mxu0 %v2300_v43  ;;  %v2403_v43 = vld [vmem:[#allocation7 + $0x60] sm:$0xff]  }
  0xb9   :  { %1161 = vmatprep.subr.bf16.mxu0 %v2307_v45  ;;  %v2405_v45 = vld [vmem:[#allocation7 + $0x68] sm:$0xff]  }
  0xba   :  { %2130 = vmatmul.mubr.msk.bf16.vlgmr.msra.gmra.mrb[12].mxu1 %vm1092_vm0, %v2654_v2 }
  0xbb   :  { %2088 = vmatpush3.bf16.msra.mxu1 %v2396_v36  ;;  %v2417_v36 = vld [vmem:[#allocation7 + $0xb0] sm:$0xff]  }
  0xbc   :  { %1162 = vmatpush1.bf16.msra.mxu0 %v2305_v48  ;;  %2089 = vmatprep.subr.bf16.mxu1 %v2397_v37  ;;  %v2418_v37 = vld [vmem:[#allocation7 + $0xb8] sm:$0xff]  }
  0xbd   :  { %1163 = vmatprep.subr.bf16.mxu0 %v2312_v49 }
  0xbf   :  { %2090 = vmatpush3.bf16.msra.mxu1 %v2398_v38 }
  0xc0   :  { %1164 = vmatpush1.bf16.msra.mxu0 %v2310_v52  ;;  %2091 = vmatprep.subr.bf16.mxu1 %v2399_v39  ;;  %v293_v52 = vlaneseq }
  0xc1   :  { %1165 = vmatprep.subr.bf16.mxu0 %v2317_v53  ;;  %v2407_v53 = vld [vmem:[#allocation7 + $0x70] sm:$0xff]  }
  0xc2   :  { %v294_v55 = vshrl.u32 %v293_v52, 7 }
  0xc3   :  { %2092 = vmatpush3.bf16.msra.mxu1 %v2400_v40  ;;  %v2419_v40 = vld [vmem:[#allocation8] sm:$0xff]  }
  0xc4   :  { %1166 = vmatpush1.bf16.msra.mxu0 %v2315_v56  ;;  %2093 = vmatprep.subr.bf16.mxu1 %v2401_v41  ;;  %v2409_v56 = vld [vmem:[#allocation7 + $0x78] sm:$0xff]   ;;  %v303_v58 = vsub.s32 2, %v294_v55  ;;  %v2420_v41 = vld [vmem:[#allocation8 + $0x8] sm:$0xff]  }
  0xc5   :  { %1167 = vmatprep.subr.bf16.mxu0 %v2322_v57  ;;  %v2410_v57 = vld [vmem:[#allocation7 + $0x38] sm:$0xff]  }
  0xc7   :  { %2094 = vmatpush3.bf16.msra.mxu1 %v2402_v42  ;;  %v2421_v42 = vld [vmem:[#allocation8 + $0x10] sm:$0xff]  }
  0xc8   :  { %1168 = vmatpush1.bf16.msra.mxu0 %v2320_v60  ;;  %2095 = vmatprep.subr.bf16.mxu1 %v2403_v43  ;;  %v2422_v43 = vld [vmem:[#allocation8 + $0x18] sm:$0xff]  }
  0xc9   :  { %1178 = vmatprep.subr.bf16.mxu0 %v2327_v62 }
  0xcb   :  { %1170 = vmatmul.mubr.bf16.vlgmr.msra.gmra.mrb[0].mxu0 %v2645_v24  ;;  %v2382_v24 = vld [vmem:[#allocation5 + $0x424] ss:$12 sps:$4 sm:$0xff]  }
  0xcc   :  { %1179 = vmatpush1.bf16.msra.mxu0 %v2325_v0  ;;  %1210 = vmatprep.mubr.bf16.mxu0 %v93_v44  ;;  %v2404_v44 = vld [vmem:[#allocation7 + $0x20] sm:$0xff]  }
  0xcd   :  { %1180 = vmatprep.subr.bf16.mxu0 %v2332_v1  ;;  %2096 = vmatpush3.bf16.msra.mxu1 %v2404_v44  ;;  %v2423_v44 = vld [vmem:[#allocation8 + $0x20] sm:$0xff]  }
  0xce   :  { %2097 = vmatprep.subr.bf16.mxu1 %v2405_v45  ;;  %v2424_v45 = vld [vmem:[#allocation8 + $0x28] sm:$0xff]  }
  0xd0   :  { %1181 = vmatpush1.bf16.msra.mxu0 %v2330_v3 }
  0xd1   :  { %1182 = vmatprep.subr.bf16.mxu0 %v2337_v4  ;;  %2098 = vmatpush3.bf16.msra.mxu1 %v2406_v46  ;;  %v2425_v46 = vld [vmem:[#allocation8 + $0x30] sm:$0xff]  }
  0xd2   :  { %2099 = vmatprep.subr.bf16.mxu1 %v2407_v53  ;;  %v1985_v53 = vld [vmem:[%s2707_s4] ss:$0 sm:$0xff]  ;;  %s2515_s4 = scalar_lea.vmem %s1826_s8, 128 }
  0xd3   :  { %p2516_p4 = scmp.ne.s32.totalorder %s1826_s8, %s2515_s4  ;;  %p2521_p6 = scmp.lt.s32.totalorder %s2515_s4, %s2515_s4 }
  0xd4   :  { %1183 = vmatpush1.bf16.msra.mxu0 %v2335_v5 }
  0xd5   :  { %1184 = vmatprep.subr.bf16.mxu0 %v2342_v6  ;;  %2100 = vmatpush3.bf16.msra.mxu1 %v2408_v54  ;;  %p2522_p7 = por %p2521_p6, %p2520_p5 }
  0xd6   :  { %2101 = vmatprep.subr.bf16.mxu1 %v2409_v56 }
  0xd7   :  { %p2523_p8 = pnand %p2522_p7, %p2516_p4 }
  0xd8   :  { %1185 = vmatpush1.bf16.msra.mxu0 %v2340_v7 }
  0xd9   :  { %1186 = vmatprep.subr.bf16.mxu0 %v2347_v8  ;;  %2102 = vmatpush3.bf16.msra.mxu1 %v2410_v57 }
  0xda   :  { %2133 = vmatprep.subr.bf16.mxu1 %v2553_v61 }
  0xdc   :  { %1187 = vmatpush1.bf16.msra.mxu0 %v2345_v9 }
  0xdd   :  { %1188 = vmatprep.subr.bf16.mxu0 %v2352_v10 }
  0xe0   :  { %1189 = vmatpush1.bf16.msra.mxu0 %v2350_v11 }
  0xe1   :  { %1190 = vmatprep.subr.bf16.mxu0 %v2357_v12 }
  0xe4   :  { %1191 = vmatpush1.bf16.msra.mxu0 %v2355_v13 }
  0xe5   :  { %1192 = vmatprep.subr.bf16.mxu0 %v2362_v14 }
  0xe8   :  { %1193 = vmatpush1.bf16.msra.mxu0 %v2360_v15 }
  0xe9   :  { %1194 = vmatprep.subr.bf16.mxu0 %v2367_v16  ;;  %v295_v16 = vsub.s32 0, %v294_v55 }
  0xec   :  { %1195 = vmatpush1.bf16.msra.mxu0 %v2365_v17  ;;  %v299_v17 = vsub.s32 1, %v294_v55 }
  0xed   :  { %1196 = vmatprep.subr.bf16.mxu0 %v2372_v18 }
  0xf0   :  { %1197 = vmatpush1.bf16.msra.mxu0 %v2370_v19 }
  0xf1   :  { %1198 = vmatprep.subr.bf16.mxu0 %v2375_v20 }
  0xf4   :  { %1199 = vmatpush1.bf16.msra.mxu0 %v2373_v21 }
  0xf5   :  { %1200 = vmatprep.subr.bf16.mxu0 %v2379_v22 }
  0xf8   :  { %1201 = vmatpush1.bf16.msra.mxu0 %v2377_v23 }
  0xf9   :  { %1202 = vmatprep.subr.bf16.mxu0 %v2382_v24 }
  0xfc   :  { %1203 = vmatpush1.bf16.msra.mxu0 %v2380_v25 }
  0xfd   :  { %1204 = vmatprep.subr.bf16.mxu0 %v2385_v26 }
 0x100   :  { %1205 = vmatpush1.bf16.msra.mxu0 %v2383_v27 }
 0x101   :  { %1206 = vmatprep.subr.bf16.mxu0 %v2388_v28 }
 0x104   :  { %1207 = vmatpush1.bf16.msra.mxu0 %v2386_v29  ;;  %v2411_v29 = vld [vmem:[#allocation7 + $0x80] sm:$0xff]  }
 0x105   :  { %1208 = vmatprep.subr.bf16.mxu0 %v2391_v30 }
 0x108   :  { %1209 = vmatpush1.bf16.msra.mxu0 %v2389_v31  ;;  %v2412_v31 = vld [vmem:[#allocation7 + $0x88] sm:$0xff]  }
 0x109   :  { %1219 = vmatprep.subr.bf16.mxu0 %v2394_v32  ;;  %v2413_v32 = vld [vmem:[#allocation7 + $0x90] sm:$0xff]  }
 0x10b   :  { %1211 = vmatmul.mubr.bf16.vlgmr.msra.gmra.mrb[0].mxu0 %v2648_v59  ;;  %v291_v59 = vld [vmem:[%s2705_s2] sm:$0x7] }
 0x10c   :  { %1220 = vmatpush1.bf16.msra.mxu0 %v2392_v33  ;;  %1251 = vmatprep.mubr.bf16.mxu0 %v2555_v34  ;;  %v304_v60 = vrot.slane %v291_v59, %v303_v58  ;;  %v296_v18 = vrot.slane %v291_v59, %v295_v16  ;;  %v300_v19 = vrot.slane %v291_v59, %v299_v17  ;;  %v2414_v33 = vld [vmem:[#allocation7 + $0x98] sm:$0xff]   ;;  %v2415_v34 = vld [vmem:[#allocation7 + $0xa0] sm:$0xff]  }
 0x117   :  { %1983 = vmatmul.mubr.msk.bf16.vlgmr.msra.gmra.mrb[0].mxu0 %vm1092_vm0, %v2654_v2 }
 0x145   :  { %v2035_v47 = vpop.f32.mrb[0].mxu1 }
 0x146   :  { %v2036_v48 = vpop.f32.mrb[1].mxu1 }
 0x147   :  { %v2037_v49 = vadd.f32 %v2036_v48, %v2035_v47  ;;  %v2038_v50 = vpop.f32.mrb[2].mxu1  ;;  %v2426_v47 = vld [vmem:[#allocation8 + $0x38] sm:$0xff]  }
 0x148   :  { %v2039_v51 = vpop.f32.mrb[3].mxu1 }
 0x149   :  { %v1295_v62 = vadd.f32 %v2037_v49, %v304_v60 }
 0x165   :  { %v2057_v63 = vpop.f32.mrb[4].mxu1 }
 0x166   :  { %v2058_v0 = vpop.f32.mrb[5].mxu1 }
 0x167   :  { %v2059_v1 = vadd.f32 %v2058_v0, %v2057_v63  ;;  %v2060_v2 = vpop.f32.mrb[6].mxu1 }
 0x168   :  { %v2061_v3 = vpop.f32.mrb[7].mxu1 }
 0x169   :  { %v1335_v4 = vadd.f32 %v2059_v1, %v1295_v62 }
 0x185   :  { %v2079_v5 = vpop.f32.mrb[8].mxu1 }
 0x186   :  { %v2080_v6 = vpop.f32.mrb[9].mxu1 }
 0x187   :  { %v2081_v7 = vadd.f32 %v2080_v6, %v2079_v5  ;;  %v2082_v8 = vpop.f32.mrb[10].mxu1 }
 0x188   :  { %v2083_v9 = vpop.f32.mrb[11].mxu1 }
 0x189   :  { %v1375_v10 = vadd.f32 %v2081_v7, %v1335_v4 }
 0x18d   :  { %v1414_v11 = vpop.f32.mrb[12].mxu1 }
 0x18e   :  { %v1415_v12 = vadd.f32 %v1414_v11, %v1375_v10  ;;  %v2131_v13 = vpop.f32.mrb[13].mxu1 }
 0x18f   :  { %v1417_v14 = vpop.f32.mrb[14].mxu1 }
 0x190   :  { %v2132_v15 = vpop.f32.mrb[15].mxu1  ;;  %v1422_v38 = vmax.f32 %v1415_v12, 0.0 }
 0x192   :  { %v1425_v39 = vpack.c.bf16 %v1422_v38, %v1422_v38 }
 0x1ea   :  { %v1253_v20 = vpop.f32.mrb[0].mxu0 }
 0x1eb   :  { %v2173_v21 = vadd.f32 %v1253_v20, %v296_v18  ;;  %v1255_v22 = vpop.f32.mrb[1].mxu0 }
 0x1ec   :  { %v2174_v23 = vadd.f32 %v1255_v22, %v300_v19  ;;  %v1257_v24 = vpop.f32.mrb[2].mxu0 }
 0x1ed   :  { %v1420_v25 = vmax.f32 %v2173_v21, 0.0  ;;  %v1258_v26 = vpop.f32.mrb[3].mxu0 }
 0x1ee   :  { %v1421_v27 = vmax.f32 %v2174_v23, 0.0 }
 0x1ef   :  { %v1423_v30 = vpack.c.bf16 %v1420_v25, %v1420_v25 }
 0x1f0   :  { %v1424_v28 = vpack.c.bf16 %v1421_v27, %v1421_v27 }
 0x1f2   :  { %1657 = vmatprep.mubr.bf16.mxu1 %v1424_v28 }
 0x1f3   :  { %1658 = vmatmul.mubr.bf16.vlgmr.msra.gmra.mrb[16].mxu1 %v1423_v30 }
 0x1f4   :  { %2134 = vmatpush3.bf16.msra.mxu1 %v2411_v29  ;;  %2149 = vmatprep.mubr.msk.bf16.mxu1 %vm2554_vm1, %v2553_v61 }
 0x1f5   :  { %2135 = vmatprep.subr.bf16.mxu1 %v2553_v61 }
 0x1f8   :  { %2136 = vmatpush3.bf16.msra.mxu1 %v2412_v31 }
 0x1f9   :  { %2137 = vmatprep.subr.bf16.mxu1 %v2553_v61 }
 0x1fc   :  { %2138 = vmatpush3.bf16.msra.mxu1 %v2413_v32 }
 0x1fd   :  { %2139 = vmatprep.subr.bf16.mxu1 %v2553_v61 }
 0x200   :  { %2140 = vmatpush3.bf16.msra.mxu1 %v2414_v33 }
 0x201   :  { %2141 = vmatprep.subr.bf16.mxu1 %v2553_v61 }
 0x204   :  { %2142 = vmatpush3.bf16.msra.mxu1 %v2415_v34 }
 0x205   :  { %2143 = vmatprep.subr.bf16.mxu1 %v2553_v61 }
 0x208   :  { %2144 = vmatpush3.bf16.msra.mxu1 %v2416_v35 }
 0x209   :  { %2145 = vmatprep.subr.bf16.mxu1 %v2553_v61 }
 0x20c   :  { %2146 = vmatpush3.bf16.msra.mxu1 %v2417_v36 }
 0x20d   :  { %2147 = vmatprep.subr.bf16.mxu1 %v2553_v61 }
 0x210   :  { %2148 = vmatpush3.bf16.msra.mxu1 %v2418_v37 }
 0x211   :  { %2153 = vmatprep.subr.bf16.mxu1 %v2553_v61 }
 0x213   :  { %2150 = vmatmul.mubr.bf16.vlgmr.msra.gmra.mrb[20].mxu1 %v1425_v39 }
 0x214   :  { %2169 = vmatprep.mubr.msk.bf16.mxu1 %vm2554_vm1, %v2553_v61  ;;  %2154 = vmatpush3.bf16.msra.mxu1 %v2419_v40 }
 0x215   :  { %2155 = vmatprep.subr.bf16.mxu1 %v2553_v61 }
 0x218   :  { %2156 = vmatpush3.bf16.msra.mxu1 %v2420_v41 }
 0x219   :  { %2157 = vmatprep.subr.bf16.mxu1 %v2553_v61 }
 0x21c   :  { %2158 = vmatpush3.bf16.msra.mxu1 %v2421_v42 }
 0x21d   :  { %2159 = vmatprep.subr.bf16.mxu1 %v2553_v61 }
 0x220   :  { %2160 = vmatpush3.bf16.msra.mxu1 %v2422_v43 }
 0x221   :  { %2161 = vmatprep.subr.bf16.mxu1 %v2553_v61 }
 0x224   :  { %2162 = vmatpush3.bf16.msra.mxu1 %v2423_v44 }
 0x225   :  { %2163 = vmatprep.subr.bf16.mxu1 %v2553_v61 }
 0x228   :  { %2164 = vmatpush3.bf16.msra.mxu1 %v2424_v45 }
 0x229   :  { %2165 = vmatprep.subr.bf16.mxu1 %v2553_v61 }
 0x22c   :  { %2166 = vmatpush3.bf16.msra.mxu1 %v2425_v46 }
 0x22d   :  { %2167 = vmatprep.subr.bf16.mxu1 %v2553_v61  ;;  %v2010_v61 = vld [vmem:[%s2709_s6] ss:$0 sm:$0xff] }
 0x230   :  { %2168 = vmatpush3.bf16.msra.mxu1 %v2426_v47 }
 0x2c6   :  { %v2103_v48 = vpop.f32.mrb[16].mxu1 }
 0x2c7   :  { %v2104_v49 = vpop.f32.mrb[17].mxu1 }
 0x2c8   :  { %v2105_v50 = vadd.f32 %v2104_v49, %v2103_v48  ;;  %v2106_v51 = vpop.f32.mrb[18].mxu1 }
 0x2c9   :  { %v2107_v52 = vpop.f32.mrb[19].mxu1 }
 0x2ca   :  { %v1660_v54 = vadd.f32 %v2105_v50, %v1985_v53 }
 0x2e6   :  { %v1699_v55 = vpop.f32.mrb[20].mxu1 }
 0x2e7   :  { %v1700_v56 = vadd.f32 %v1699_v55, %v1660_v54  ;;  %v2151_v57 = vpop.f32.mrb[21].mxu1 }
 0x2e8   :  { %v1702_v58 = vpop.f32.mrb[22].mxu1 }
 0x2e9   :  { %v1705_v59 = vmax.f32 %v1700_v56, 0.0  ;;  %v2152_v60 = vpop.f32.mrb[23].mxu1 }
 0x2eb   :  { %v1706_v62 = vpack.c.bf16 %v1705_v59, %v1705_v59 }
 0x2ed   :  { %2170 = vmatmul.mubr.bf16.vlgmr.msra.gmra.mrb[24].mxu1 %v1706_v62 }
 0x3c0   :  { %v1812_v63 = vpop.f32.mrb[24].mxu1 }
 0x3c1   :  { %v1813_v0 = vadd.f32 %v2010_v61, %v1812_v63  ;;  %v2171_v1 = vpop.f32.mrb[25].mxu1 }
 0x3c2   :  { %v1815_v2 = vpop.f32.mrb[26].mxu1 }
 0x3c3   :  { %1818 = vst [vmem:[#allocation10] sm:$0xff] %v1813_v0  ;;  %v2172_v3 = vpop.f32.mrb[27].mxu1 }
 0x3c4   :  { %2526 = shalt.err (!%p2523_p8)
}
 0x3c5   :  { %s2527_s6 = scalar_lea.hbm %s2710_s7, 128 }
 0x3c6   :  { %p2528_p9 = scmp.ne.s32.totalorder %s2710_s7, %s2527_s6  ;;  %p2531_p10 = scmp.lt.u32.totalorder %s2527_s6, %s2710_s7 }
 0x3c8   :  { %p2533_p11 = pnand %p2531_p10, %p2528_p9 }
 0x3ca   :  { %2536 = shalt.err (!%p2533_p11)
}
 0x3cb   :  { %1828 = dma.vmem_to_hbm [thread:$0]  %s1826_s8, 128, %s2710_s7, [#allocation4]  }
 0x3cc   :  { %2543 = dma.done.wait [#allocation4], 128  }
 0x3cd   :  { %2544 = vsyncadd [#allocation4], 4294967168 }
 0x3ce   :  { %1832 = vsyncpa [#allocation3], 1 }
 0x3cf   :  { %1833 = vsyncpa [#allocation6], 1 }
 0x3d0   :  { %1834 = vsyncpa [#allocation9], 1 }
 0x3d1   :  { %1835 = vsyncpa [#allocation4], 1 }

// kernel: tpu_custom_call.1
= control target key start
LH: loop header
LB: loop body
LE: loop exit
PB: predicated region body
PF: predicated region fallthrough
CT: control target
= control target key end

     0   :  { %12 = vsyncpa [#allocation3], 0  ;;  %s2703_s0 = inlined_call_operand.hbm [shape: f32[8,784], index: 0, kind: input, shape index: {}]   ;;  %s2704_s1 = inlined_call_operand.hbm [shape: bf16[784,384], index: 1, kind: input, shape index: {}]   ;;  %s2705_s2 = inlined_call_operand.vmem [shape: f32[1,384], index: 2, kind: input, shape index: {}]   ;;  %s2706_s3 = inlined_call_operand.hbm [shape: bf16[384,128], index: 3, kind: input, shape index: {}]   ;;  %s2707_s4 = inlined_call_operand.vmem [shape: f32[1,128], index: 4, kind: input, shape index: {}]   ;;  %s2708_s5 = inlined_call_operand.hbm [shape: bf16[128,128], index: 5, kind: input, shape index: {}]   ;;  %s2709_s6 = inlined_call_operand.vmem [shape: f32[1,128], index: 6, kind: input, shape index: {}]   ;;  %s2710_s7 = inlined_call_operand.hbm [shape: f32[8,128], index: 7, kind: output, shape index: {}]  }
   0x1   :  { %13 = vsyncpa [#allocation6], 0 }
   0x2   :  { %14 = vsyncpa [#allocation9], 0 }
   0x3   :  { %15 = vsyncpa [#allocation4], 0  ;;  %s2545_s24 = smov [#allocation5]   ;;  %s2427_s28 = scalar_lea.hbm %s2704_s1, 18816 }
   0x4   :  { %s31_s25 = sshll.u32 %s2545_s24, 4  ;;  %p2428_p0 = scmp.ne.s32.totalorder %s2704_s1, %s2427_s28  ;;  %s32_s25 = int_to_ptr.vmem [resolvable:$true] %s31_s25 }
   0x5   :  { %p2431_p1 = scmp.lt.u32.totalorder %s2427_s28, %s2704_s1 }
   0x7   :  { %p2433_p2 = pnand %p2431_p1, %p2428_p0 }
   0x9   :  { %2436 = shalt.err (!%p2433_p2)
}
   0xa   :  { %s2437_s10 = scalar_lea.vmem %s32_s25, 18816  ;;  %p2442_p4 = scmp.lt.s32.totalorder %s32_s25, %s32_s25 }
   0xb   :  { %p2438_p3 = scmp.ne.s32.totalorder %s32_s25, %s2437_s10  ;;  %p2443_p5 = scmp.lt.s32.totalorder %s2437_s10, %s2437_s10 }
   0xd   :  { %p2444_p6 = por %p2443_p5, %p2442_p4 }
   0xf   :  { %p2445_p7 = pnand %p2444_p6, %p2438_p3 }
  0x11   :  { %2448 = shalt.err (!%p2445_p7)
}
  0x12   :  { %s2546_s11 = smov 192   ;;  %s2547_s12 = smov 12  }
  0x13   :  { %37 = dma.hbm_to_vmem [thread:$0]  %s2704_s1, 18816, %s32_s25, [#allocation6], %s2546_s11, %s2546_s11, %s2547_s12  }
  0x14   :  { %s2548_s15 = smov [#allocation2]   ;;  %s2549_s17 = smov [#allocation7]  }
  0x15   :  { %s22_s16 = sshll.u32 %s2548_s15, 4  ;;  %s45_s18 = sshll.u32 %s2549_s17, 4  ;;  %s23_s16 = int_to_ptr.vmem [resolvable:$true] %s22_s16  ;;  %s46_s18 = int_to_ptr.vmem [resolvable:$true] %s45_s18 }
  0x16   :  { %s2449_s21 = scalar_lea.hbm %s2703_s0, 896 }
  0x17   :  { %p2450_p8 = scmp.ne.s32.totalorder %s2703_s0, %s2449_s21  ;;  %p2453_p9 = scmp.lt.u32.totalorder %s2449_s21, %s2703_s0 }
  0x19   :  { %p2455_p10 = pnand %p2453_p9, %p2450_p8 }
  0x1b   :  { %2458 = shalt.err (!%p2455_p10)
}
  0x1c   :  { %s2459_s1 = scalar_lea.vmem %s23_s16, 896  ;;  %p2464_p12 = scmp.lt.s32.totalorder %s23_s16, %s23_s16 }
  0x1d   :  { %p2460_p11 = scmp.ne.s32.totalorder %s23_s16, %s2459_s1  ;;  %p2465_p13 = scmp.lt.s32.totalorder %s2459_s1, %s2459_s1 }
  0x1f   :  { %p2466_p0 = por %p2465_p13, %p2464_p12 }
  0x21   :  { %p2467_p1 = pnand %p2466_p0, %p2460_p11 }
  0x23   :  { %2470 = shalt.err (!%p2467_p1)
}
  0x24   :  { %25 = dma.hbm_to_vmem [thread:$0]  %s2703_s0, 896, %s23_s16, [#allocation3]  }
  0x25   :  { %s2471_s30 = scalar_lea.hbm %s2706_s3, 3072 }
  0x26   :  { %p2472_p2 = scmp.ne.s32.totalorder %s2706_s3, %s2471_s30  ;;  %p2475_p3 = scmp.lt.u32.totalorder %s2471_s30, %s2706_s3 }
  0x28   :  { %p2477_p4 = pnand %p2475_p3, %p2472_p2 }
  0x2a   :  { %2480 = shalt.err (!%p2477_p4)
}
  0x2b   :  { %s2481_s12 = scalar_lea.vmem %s46_s18, 3072  ;;  %p2486_p6 = scmp.lt.s32.totalorder %s46_s18, %s46_s18 }
  0x2c   :  { %p2482_p5 = scmp.ne.s32.totalorder %s46_s18, %s2481_s12  ;;  %p2487_p7 = scmp.lt.s32.totalorder %s2481_s12, %s2481_s12 }
  0x2e   :  { %p2488_p8 = por %p2487_p7, %p2486_p6 }
  0x30   :  { %p2489_p9 = pnand %p2488_p8, %p2482_p5 }
  0x32   :  { %2492 = shalt.err (!%p2489_p9)
}
  0x33   :  { %s2550_s0 = smov 64   ;;  %s2551_s13 = smov 4  }
  0x34   :  { %51 = dma.hbm_to_vmem [thread:$0]  %s2706_s3, 3072, %s46_s18, [#allocation6], %s2550_s0, %s2550_s0, %s2551_s13  }
  0x35   :  { %s2552_s16 = smov [#allocation8]   ;;  %s2493_s21 = scalar_lea.hbm %s2708_s5, 1024 }
  0x36   :  { %s59_s17 = sshll.u32 %s2552_s16, 4  ;;  %p2494_p10 = scmp.ne.s32.totalorder %s2708_s5, %s2493_s21  ;;  %s60_s17 = int_to_ptr.vmem [resolvable:$true] %s59_s17 }
  0x37   :  { %p2497_p11 = scmp.lt.u32.totalorder %s2493_s21, %s2708_s5 }
  0x39   :  { %p2499_p12 = pnand %p2497_p11, %p2494_p10 }
  0x3b   :  { %2502 = shalt.err (!%p2499_p12)
}
  0x3c   :  { %s2503_s1 = scalar_lea.vmem %s60_s17, 1024  ;;  %p2508_p0 = scmp.lt.s32.totalorder %s60_s17, %s60_s17 }
  0x3d   :  { %p2504_p13 = scmp.ne.s32.totalorder %s60_s17, %s2503_s1  ;;  %p2509_p1 = scmp.lt.s32.totalorder %s2503_s1, %s2503_s1 }
  0x3f   :  { %p2510_p2 = por %p2509_p1, %p2508_p0 }
  0x41   :  { %p2511_p3 = pnand %p2510_p2, %p2504_p13 }
  0x43   :  { %2514 = shalt.err (!%p2511_p3)
}
  0x44   :  { %65 = dma.hbm_to_vmem [thread:$0]  %s2708_s5, 1024, %s60_s17, [#allocation9], %s2550_s0, %s2550_s0, %s2551_s13  }
  0x45   :  { %2537 = dma.done.wait [#allocation3], 896  }
  0x46   :  { %2538 = vsyncadd [#allocation3], 4294966400 }
  0x47   :  { %2539 = dma.done.wait [#allocation6], 21888  }
  0x48   :  { %2540 = vsyncadd [#allocation6], 4294945408 }
  0x49   :  { %2541 = dma.done.wait [#allocation9], 1024  }
  0x4a   :  { %2542 = vsyncadd [#allocation9], 4294966272  ;;  %v2199_v0 = vld [vmem:[#allocation5 + $0x4] ss:$12 sps:$4 sm:$0xff]   ;;  %v2201_v1 = vld [vmem:[#allocation5] ss:$12 sps:$4 sm:$0xff]  }
  0x4b   :  { %1096 = vmatprep.subr.bf16.mxu0 %v2199_v0  ;;  %v2202_v2 = vld [vmem:[#allocation5 + $0x1c] ss:$12 sps:$4 sm:$0xff]   ;;  %v2204_v3 = vld [vmem:[#allocation5 + $0x18] ss:$12 sps:$4 sm:$0xff]   ;;  %v2205_v4 = vld [vmem:[#allocation5 + $0x34] ss:$12 sps:$4 sm:$0xff]  }
  0x4c   :  { %1097 = vmatpush1.bf16.msra.mxu0 %v2201_v1  ;;  %v2207_v5 = vld [vmem:[#allocation5 + $0x30] ss:$12 sps:$4 sm:$0xff]   ;;  %v2208_v6 = vld [vmem:[#allocation5 + $0x4c] ss:$12 sps:$4 sm:$0xff]   ;;  %v2210_v7 = vld [vmem:[#allocation5 + $0x48] ss:$12 sps:$4 sm:$0xff]  }
  0x4d   :  { %1098 = vmatprep.subr.bf16.mxu0 %v2202_v2  ;;  %v2211_v8 = vld [vmem:[#allocation5 + $0x64] ss:$12 sps:$4 sm:$0xff]   ;;  %v2213_v9 = vld [vmem:[#allocation5 + $0x60] ss:$12 sps:$4 sm:$0xff]   ;;  %v2214_v10 = vld [vmem:[#allocation5 + $0x7c] ss:$12 sps:$4 sm:$0xff]  }
  0x4e   :  { %v2216_v11 = vld [vmem:[#allocation5 + $0x78] ss:$12 sps:$4 sm:$0xff]   ;;  %v2217_v12 = vld [vmem:[#allocation5 + $0x94] ss:$12 sps:$4 sm:$0xff]   ;;  %v2219_v15 = vld [vmem:[#allocation5 + $0x90] ss:$12 sps:$4 sm:$0xff]  }
  0x4f   :  { %v82_v13 = vld [vmem:[#allocation2 + $0x8] sm:$0xff]  ;;  %v2220_v16 = vld [vmem:[#allocation5 + $0xac] ss:$12 sps:$4 sm:$0xff]   ;;  %v2226_v24 = vld [vmem:[#allocation5 + $0xdc] ss:$12 sps:$4 sm:$0xff]   ;;  %vm1092_vm0 = vcmask 130048  }
  0x50   :  { %1099 = vmatpush1.bf16.msra.mxu0 %v2204_v3  ;;  %v89_v14 = vpack.c.bf16 %v82_v13, %v82_v13  ;;  %v2253_v17 = vld [vmem:[#allocation5 + $0xc8] ss:$12 sps:$4 sm:$0xff]   ;;  %v2223_v20 = vld [vmem:[#allocation5 + $0xc4] ss:$12 sps:$4 sm:$0xff]   ;;  %v2258_v21 = vld [vmem:[#allocation5 + $0xe0] ss:$12 sps:$4 sm:$0xff]  }
  0x51   :  { %1100 = vmatprep.subr.bf16.mxu0 %v2205_v4  ;;  %v2254_v18 = vld [vmem:[#allocation5 + $0x8] ss:$12 sps:$4 sm:$0xff]   ;;  %2019 = vmatprep.subr.bf16.mxu1 %v2253_v17  ;;  %v2259_v22 = vld [vmem:[#allocation5 + $0x20] ss:$12 sps:$4 sm:$0xff]   ;;  %v2263_v25 = vld [vmem:[#allocation5 + $0xf8] ss:$12 sps:$4 sm:$0xff]  }
  0x52   :  { %1128 = vmatprep.mubr.bf16.mxu0 %v89_v14  ;;  %1292 = vmatprep.mubr.bf16.mxu1 %v89_v14  ;;  %v2222_v19 = vld [vmem:[#allocation5 + $0xa8] ss:$12 sps:$4 sm:$0xff]   ;;  %v2225_v23 = vld [vmem:[#allocation5 + $0xc0] ss:$12 sps:$4 sm:$0xff]   ;;  %v2264_v26 = vld [vmem:[#allocation5 + $0x38] ss:$12 sps:$4 sm:$0xff]  }
  0x53   :  { %2020 = vmatpush3.bf16.msra.mxu1 %v2254_v18  ;;  %v2228_v27 = vld [vmem:[#allocation5 + $0xd8] ss:$12 sps:$4 sm:$0xff]   ;;  %v2229_v28 = vld [vmem:[#allocation5 + $0xf4] ss:$12 sps:$4 sm:$0xff]   ;;  %v2268_v29 = vld [vmem:[#allocation5 + $0x110] ss:$12 sps:$4 sm:$0xff]  }
  0x54   :  { %1101 = vmatpush1.bf16.msra.mxu0 %v2207_v5  ;;  %2021 = vmatprep.subr.bf16.mxu1 %v2258_v21  ;;  %v2269_v30 = vld [vmem:[#allocation5 + $0x50] ss:$12 sps:$4 sm:$0xff]   ;;  %v2273_v32 = vld [vmem:[#allocation5 + $0x128] ss:$12 sps:$4 sm:$0xff]   ;;  %v2232_v33 = vld [vmem:[#allocation5 + $0x10c] ss:$12 sps:$4 sm:$0xff]  }
  0x55   :  { %1102 = vmatprep.subr.bf16.mxu0 %v2208_v6  ;;  %v2231_v31 = vld [vmem:[#allocation5 + $0xf0] ss:$12 sps:$4 sm:$0xff]   ;;  %v2274_v34 = vld [vmem:[#allocation5 + $0x68] ss:$12 sps:$4 sm:$0xff]   ;;  %v2278_v35 = vld [vmem:[#allocation5 + $0x140] ss:$12 sps:$4 sm:$0xff]  }
  0x56   :  { %v2234_v36 = vld [vmem:[#allocation5 + $0x108] ss:$12 sps:$4 sm:$0xff]   ;;  %v2235_v37 = vld [vmem:[#allocation5 + $0x124] ss:$12 sps:$4 sm:$0xff]   ;;  %v2279_v38 = vld [vmem:[#allocation5 + $0x80] ss:$12 sps:$4 sm:$0xff]  }
  0x57   :  { %2022 = vmatpush3.bf16.msra.mxu1 %v2259_v22  ;;  %v2283_v39 = vld [vmem:[#allocation5 + $0x158] ss:$12 sps:$4 sm:$0xff]   ;;  %v2237_v40 = vld [vmem:[#allocation5 + $0x120] ss:$12 sps:$4 sm:$0xff]   ;;  %v2238_v41 = vld [vmem:[#allocation5 + $0x13c] ss:$12 sps:$4 sm:$0xff]  }
  0x58   :  { %1103 = vmatpush1.bf16.msra.mxu0 %v2210_v7  ;;  %2023 = vmatprep.subr.bf16.mxu1 %v2263_v25  ;;  %v2284_v42 = vld [vmem:[#allocation5 + $0x98] ss:$12 sps:$4 sm:$0xff]   ;;  %v2288_v43 = vld [vmem:[#allocation5 + $0x170] ss:$12 sps:$4 sm:$0xff]   ;;  %v2241_v45 = vld [vmem:[#allocation5 + $0x154] ss:$12 sps:$4 sm:$0xff]  }
  0x59   :  { %1104 = vmatprep.subr.bf16.mxu0 %v2211_v8  ;;  %v2240_v44 = vld [vmem:[#allocation5 + $0x138] ss:$12 sps:$4 sm:$0xff]   ;;  %v2289_v46 = vld [vmem:[#allocation5 + $0xb0] ss:$12 sps:$4 sm:$0xff]   ;;  %v2293_v47 = vld [vmem:[#allocation5 + $0x248] ss:$12 sps:$4 sm:$0xff]  }
  0x5a   :  { %v2243_v48 = vld [vmem:[#allocation5 + $0x150] ss:$12 sps:$4 sm:$0xff]   ;;  %v81_v49 = vld [vmem:[#allocation2] sm:$0xff]  ;;  %v2303_v57 = vld [vmem:[#allocation5 + $0x278] ss:$12 sps:$4 sm:$0xff]   ;;  %vm2554_vm1 = vmmov 0  }
  0x5b   :  { %2024 = vmatpush3.bf16.msra.mxu1 %v2264_v26  ;;  %v2244_v50 = vld [vmem:[#allocation5 + $0x16c] ss:$12 sps:$4 sm:$0xff]   ;;  %v2294_v51 = vld [vmem:[#allocation5 + $0x188] ss:$12 sps:$4 sm:$0xff]   ;;  %v88_v52 = vpack.c.bf16 %v81_v49, %v81_v49  ;;  %v2249_v55 = vld [vmem:[#allocation5 + $0x184] ss:$12 sps:$4 sm:$0xff]  }
  0x5c   :  { %1105 = vmatpush1.bf16.msra.mxu0 %v2213_v9  ;;  %2025 = vmatprep.subr.bf16.mxu1 %v2268_v29  ;;  %v2298_v53 = vld [vmem:[#allocation5 + $0x260] ss:$12 sps:$4 sm:$0xff]   ;;  %v2246_v54 = vld [vmem:[#allocation5 + $0x168] ss:$12 sps:$4 sm:$0xff]   ;;  %v2304_v60 = vld [vmem:[#allocation5 + $0x1b8] ss:$12 sps:$4 sm:$0xff]  }
  0x5d   :  { %1106 = vmatprep.subr.bf16.mxu0 %v2214_v10  ;;  %v2299_v56 = vld [vmem:[#allocation5 + $0x1a0] ss:$12 sps:$4 sm:$0xff]   ;;  %v2252_v59 = vld [vmem:[#allocation5 + $0x19c] ss:$12 sps:$4 sm:$0xff]   ;;  %v2250_v62 = vld [vmem:[#allocation5 + $0x198] ss:$12 sps:$4 sm:$0xff]  }
  0x5e   :  { %v2247_v58 = vld [vmem:[#allocation5 + $0x180] ss:$12 sps:$4 sm:$0xff]   ;;  %v2308_v61 = vld [vmem:[#allocation5 + $0x290] ss:$12 sps:$4 sm:$0xff]   ;;  %v2313_v1 = vld [vmem:[#allocation5 + $0x2a8] ss:$12 sps:$4 sm:$0xff]  }
  0x5f   :  { %2026 = vmatpush3.bf16.msra.mxu1 %v2269_v30  ;;  %v2257_v63 = vld [vmem:[#allocation5 + $0x1b4] ss:$12 sps:$4 sm:$0xff]   ;;  %v2309_v0 = vld [vmem:[#allocation5 + $0x1d0] ss:$12 sps:$4 sm:$0xff]   ;;  %v2262_v3 = vld [vmem:[#allocation5 + $0x1cc] ss:$12 sps:$4 sm:$0xff]  }
  0x60   :  { %1107 = vmatpush1.bf16.msra.mxu0 %v2216_v11  ;;  %2027 = vmatprep.subr.bf16.mxu1 %v2273_v32  ;;  %v2255_v2 = vld [vmem:[#allocation5 + $0x1b0] ss:$12 sps:$4 sm:$0xff]   ;;  %v2314_v4 = vld [vmem:[#allocation5 + $0x1e8] ss:$12 sps:$4 sm:$0xff]   ;;  %v2318_v5 = vld [vmem:[#allocation5 + $0x2c0] ss:$12 sps:$4 sm:$0xff]  }
  0x61   :  { %1108 = vmatprep.subr.bf16.mxu0 %v2217_v12  ;;  %v84_v6 = vld [vmem:[#allocation2 + $0x18] sm:$0xff]  ;;  %v2260_v7 = vld [vmem:[#allocation5 + $0x1c8] ss:$12 sps:$4 sm:$0xff]   ;;  %v2329_v18 = vld [vmem:[#allocation5 + $0x230] ss:$12 sps:$4 sm:$0xff]   ;;  %s2556_s30 = smov [#allocation10]  }
  0x62   :  { %v91_v8 = vpack.c.bf16 %v84_v6, %v84_v6  ;;  %v2267_v9 = vld [vmem:[#allocation5 + $0x1e4] ss:$12 sps:$4 sm:$0xff]   ;;  %v2319_v10 = vld [vmem:[#allocation5 + $0x200] ss:$12 sps:$4 sm:$0xff]   ;;  %v2272_v13 = vld [vmem:[#allocation5 + $0x1fc] ss:$12 sps:$4 sm:$0xff]  }
  0x63   :  { %2028 = vmatpush3.bf16.msra.mxu1 %v2274_v34  ;;  %v2323_v11 = vld [vmem:[#allocation5 + $0x2d8] ss:$12 sps:$4 sm:$0xff]   ;;  %v2265_v12 = vld [vmem:[#allocation5 + $0x1e0] ss:$12 sps:$4 sm:$0xff]   ;;  %v2275_v21 = vld [vmem:[#allocation5 + $0x210] ss:$12 sps:$4 sm:$0xff]  }
  0x64   :  { %1109 = vmatpush1.bf16.msra.mxu0 %v2219_v15  ;;  %2029 = vmatprep.subr.bf16.mxu1 %v2278_v35  ;;  %v2324_v14 = vld [vmem:[#allocation5 + $0x218] ss:$12 sps:$4 sm:$0xff]   ;;  %v2328_v15 = vld [vmem:[#allocation5 + $0x2f0] ss:$12 sps:$4 sm:$0xff]   ;;  %v2277_v17 = vld [vmem:[#allocation5 + $0x214] ss:$12 sps:$4 sm:$0xff]  }
  0x65   :  { %1110 = vmatprep.subr.bf16.mxu0 %v2220_v16  ;;  %v2270_v16 = vld [vmem:[#allocation5 + $0x1f8] ss:$12 sps:$4 sm:$0xff]   ;;  %v2338_v25 = vld [vmem:[#allocation5 + $0x3e0] ss:$12 sps:$4 sm:$0xff]   ;;  %v2280_v26 = vld [vmem:[#allocation5 + $0x228] ss:$12 sps:$4 sm:$0xff]  }
  0x66   :  { %v2282_v22 = vld [vmem:[#allocation5 + $0x22c] ss:$12 sps:$4 sm:$0xff]   ;;  %v2297_v35 = vld [vmem:[#allocation5 + $0x274] ss:$12 sps:$4 sm:$0xff]   ;;  %v2312_v49 = vld [vmem:[#allocation5 + $0x2bc] ss:$12 sps:$4 sm:$0xff]  }
  0x67   :  { %2030 = vmatpush3.bf16.msra.mxu1 %v2279_v38  ;;  %v2343_v29 = vld [vmem:[#allocation5 + $0x3f8] ss:$12 sps:$4 sm:$0xff]   ;;  %v2285_v30 = vld [vmem:[#allocation5 + $0x240] ss:$12 sps:$4 sm:$0xff]   ;;  %v2295_v38 = vld [vmem:[#allocation5 + $0x270] ss:$12 sps:$4 sm:$0xff]  }
  0x68   :  { %1111 = vmatpush1.bf16.msra.mxu0 %v2222_v19  ;;  %2031 = vmatprep.subr.bf16.mxu1 %v2283_v39  ;;  %v2333_v19 = vld [vmem:[#allocation5 + $0x3c8] ss:$12 sps:$4 sm:$0xff]   ;;  %v2344_v32 = vld [vmem:[#allocation5 + $0x338] ss:$12 sps:$4 sm:$0xff]   ;;  %s1825_s8 = sshll.u32 %s2556_s30, 4  ;;  %s1826_s8 = int_to_ptr.vmem [resolvable:$true] %s1825_s8 }
  0x69   :  { %1112 = vmatprep.subr.bf16.mxu0 %v2223_v20  ;;  %v83_v20 = vld [vmem:[#allocation2 + $0x10] sm:$0xff]  ;;  %p2520_p5 = scmp.lt.s32.totalorder %s1826_s8, %s1826_s8 }
  0x6a   :  { %v2290_v34 = vld [vmem:[#allocation5 + $0x258] ss:$12 sps:$4 sm:$0xff]  }
  0x6b   :  { %2032 = vmatpush3.bf16.msra.mxu1 %v2284_v42  ;;  %v2302_v39 = vld [vmem:[#allocation5 + $0x28c] ss:$12 sps:$4 sm:$0xff]   ;;  %v86_v42 = vld [vmem:[#allocation2 + $0x28] sm:$0xff] }
  0x6c   :  { %1113 = vmatpush1.bf16.msra.mxu0 %v2225_v23  ;;  %2033 = vmatprep.subr.bf16.mxu1 %v2288_v43  ;;  %v2334_v23 = vld [vmem:[#allocation5 + $0x308] ss:$12 sps:$4 sm:$0xff]   ;;  %v2342_v6 = vld [vmem:[#allocation5 + $0x34c] ss:$12 sps:$4 sm:$0xff]  }
  0x6d   :  { %1114 = vmatprep.subr.bf16.mxu0 %v2226_v24  ;;  %v2645_v24 = vpack.c.bf16 %v83_v20, %v83_v20  ;;  %v2300_v43 = vld [vmem:[#allocation5 + $0x288] ss:$12 sps:$4 sm:$0xff]  }
  0x6e   :  { %v2375_v20 = vld [vmem:[#allocation5 + $0x3f4] ss:$12 sps:$4 sm:$0xff]  }
  0x6f   :  { %2034 = vmatpush3.bf16.msra.mxu1 %v2289_v46  ;;  %v2359_v46 = vld [vmem:[#allocation5 + $0x380] ss:$12 sps:$4 sm:$0xff]  }
  0x70   :  { %1115 = vmatpush1.bf16.msra.mxu0 %v2228_v27  ;;  %2041 = vmatprep.subr.bf16.mxu1 %v2293_v47  ;;  %v2287_v27 = vld [vmem:[#allocation5 + $0x244] ss:$12 sps:$4 sm:$0xff]  }
  0x71   :  { %1116 = vmatprep.subr.bf16.mxu0 %v2229_v28  ;;  %v2339_v28 = vld [vmem:[#allocation5 + $0x320] ss:$12 sps:$4 sm:$0xff]   ;;  %v2363_v47 = vld [vmem:[#allocation5 + $0x458] ss:$12 sps:$4 sm:$0xff]  }
  0x72   :  { %1293 = vmatmul.mubr.bf16.vlgmr.msra.gmra.mrb[0].mxu1 %v88_v52 }
  0x73   :  { %2042 = vmatpush3.bf16.msra.mxu1 %v2294_v51  ;;  %1332 = vmatprep.mubr.bf16.mxu1 %v91_v8  ;;  %v2368_v51 = vld [vmem:[#allocation5 + $0x470] ss:$12 sps:$4 sm:$0xff]  }
  0x74   :  { %1117 = vmatpush1.bf16.msra.mxu0 %v2231_v31  ;;  %2043 = vmatprep.subr.bf16.mxu1 %v2298_v53  ;;  %v2292_v31 = vld [vmem:[#allocation5 + $0x25c] ss:$12 sps:$4 sm:$0xff]   ;;  %v2317_v53 = vld [vmem:[#allocation5 + $0x2d4] ss:$12 sps:$4 sm:$0xff]  }
  0x75   :  { %1118 = vmatprep.subr.bf16.mxu0 %v2232_v33  ;;  %v2348_v33 = vld [vmem:[#allocation5 + $0x410] ss:$12 sps:$4 sm:$0xff]  }
  0x77   :  { %2044 = vmatpush3.bf16.msra.mxu1 %v2299_v56  ;;  %v2315_v56 = vld [vmem:[#allocation5 + $0x2d0] ss:$12 sps:$4 sm:$0xff]  }
  0x78   :  { %1119 = vmatpush1.bf16.msra.mxu0 %v2234_v36  ;;  %2045 = vmatprep.subr.bf16.mxu1 %v2303_v57  ;;  %v2349_v36 = vld [vmem:[#allocation5 + $0x350] ss:$12 sps:$4 sm:$0xff]   ;;  %v2322_v57 = vld [vmem:[#allocation5 + $0x2ec] ss:$12 sps:$4 sm:$0xff]  }
  0x79   :  { %1120 = vmatprep.subr.bf16.mxu0 %v2235_v37  ;;  %v2353_v37 = vld [vmem:[#allocation5 + $0x428] ss:$12 sps:$4 sm:$0xff]  }
  0x7b   :  { %2046 = vmatpush3.bf16.msra.mxu1 %v2304_v60  ;;  %v2320_v60 = vld [vmem:[#allocation5 + $0x2e8] ss:$12 sps:$4 sm:$0xff]  }
  0x7c   :  { %1121 = vmatpush1.bf16.msra.mxu0 %v2237_v40  ;;  %2047 = vmatprep.subr.bf16.mxu1 %v2308_v61  ;;  %v2354_v40 = vld [vmem:[#allocation5 + $0x368] ss:$12 sps:$4 sm:$0xff]   ;;  %v2553_v61 = vmov 0.0  }
  0x7d   :  { %1122 = vmatprep.subr.bf16.mxu0 %v2238_v41  ;;  %v2358_v41 = vld [vmem:[#allocation5 + $0x440] ss:$12 sps:$4 sm:$0xff]  }
  0x7f   :  { %2048 = vmatpush3.bf16.msra.mxu1 %v2309_v0  ;;  %v2325_v0 = vld [vmem:[#allocation5 + $0x300] ss:$12 sps:$4 sm:$0xff]  }
  0x80   :  { %1123 = vmatpush1.bf16.msra.mxu0 %v2240_v44  ;;  %2049 = vmatprep.subr.bf16.mxu1 %v2313_v1  ;;  %v93_v44 = vpack.c.bf16 %v86_v42, %v86_v42  ;;  %v2332_v1 = vld [vmem:[#allocation5 + $0x31c] ss:$12 sps:$4 sm:$0xff]   ;;  %v2402_v42 = vld [vmem:[#allocation7 + $0x18] sm:$0xff]  }
  0x81   :  { %1124 = vmatprep.subr.bf16.mxu0 %v2241_v45  ;;  %v2307_v45 = vld [vmem:[#allocation5 + $0x2a4] ss:$12 sps:$4 sm:$0xff]  }
  0x83   :  { %2050 = vmatpush3.bf16.msra.mxu1 %v2314_v4  ;;  %v2337_v4 = vld [vmem:[#allocation5 + $0x334] ss:$12 sps:$4 sm:$0xff]  }
  0x84   :  { %1125 = vmatpush1.bf16.msra.mxu0 %v2243_v48  ;;  %2051 = vmatprep.subr.bf16.mxu1 %v2318_v5  ;;  %v2305_v48 = vld [vmem:[#allocation5 + $0x2a0] ss:$12 sps:$4 sm:$0xff]   ;;  %v2335_v5 = vld [vmem:[#allocation5 + $0x330] ss:$12 sps:$4 sm:$0xff]  }
  0x85   :  { %1126 = vmatprep.subr.bf16.mxu0 %v2244_v50  ;;  %v2364_v50 = vld [vmem:[#allocation5 + $0x398] ss:$12 sps:$4 sm:$0xff]  }
  0x87   :  { %2052 = vmatpush3.bf16.msra.mxu1 %v2319_v10  ;;  %v2352_v10 = vld [vmem:[#allocation5 + $0x37c] ss:$12 sps:$4 sm:$0xff]  }
  0x88   :  { %1127 = vmatpush1.bf16.msra.mxu0 %v2246_v54  ;;  %2053 = vmatprep.subr.bf16.mxu1 %v2323_v11  ;;  %v2369_v54 = vld [vmem:[#allocation5 + $0x3b0] ss:$12 sps:$4 sm:$0xff]   ;;  %v2350_v11 = vld [vmem:[#allocation5 + $0x378] ss:$12 sps:$4 sm:$0xff]  }
  0x89   :  { %1137 = vmatprep.subr.bf16.mxu0 %v2249_v55  ;;  %v85_v55 = vld [vmem:[#allocation2 + $0x20] sm:$0xff] }
  0x8b   :  { %1129 = vmatmul.mubr.bf16.vlgmr.msra.gmra.mrb[0].mxu0 %v88_v52  ;;  %2054 = vmatpush3.bf16.msra.mxu1 %v2324_v14  ;;  %v2310_v52 = vld [vmem:[#allocation5 + $0x2b8] ss:$12 sps:$4 sm:$0xff]  }
  0x8c   :  { %1138 = vmatpush1.bf16.msra.mxu0 %v2247_v58  ;;  %1169 = vmatprep.mubr.bf16.mxu0 %v91_v8  ;;  %v2376_v58 = vld [vmem:[#allocation5 + $0x488] ss:$12 sps:$4 sm:$0xff]   ;;  %v2347_v8 = vld [vmem:[#allocation5 + $0x364] ss:$12 sps:$4 sm:$0xff]   ;;  %v2362_v14 = vld [vmem:[#allocation5 + $0x3ac] ss:$12 sps:$4 sm:$0xff]  }
  0x8d   :  { %1139 = vmatprep.subr.bf16.mxu0 %v2252_v59  ;;  %2055 = vmatprep.subr.bf16.mxu1 %v2328_v15  ;;  %v2648_v59 = vpack.c.bf16 %v85_v55, %v85_v55  ;;  %v2360_v15 = vld [vmem:[#allocation5 + $0x3a8] ss:$12 sps:$4 sm:$0xff]  }
  0x8f   :  { %2056 = vmatpush3.bf16.msra.mxu1 %v2329_v18  ;;  %v2372_v18 = vld [vmem:[#allocation5 + $0x3dc] ss:$12 sps:$4 sm:$0xff]  }
  0x90   :  { %1140 = vmatpush1.bf16.msra.mxu0 %v2250_v62  ;;  %2063 = vmatprep.subr.bf16.mxu1 %v2333_v19  ;;  %v2327_v62 = vld [vmem:[#allocation5 + $0x304] ss:$12 sps:$4 sm:$0xff]  }
  0x91   :  { %1141 = vmatprep.subr.bf16.mxu0 %v2257_v63  ;;  %v87_v63 = vld [vmem:[#allocation2 + $0x30] sm:$0xff] }
  0x92   :  { %1333 = vmatmul.mubr.bf16.vlgmr.msra.gmra.mrb[4].mxu1 %v2645_v24  ;;  %v2370_v19 = vld [vmem:[#allocation5 + $0x3d8] ss:$12 sps:$4 sm:$0xff]  }
  0x93   :  { %2064 = vmatpush3.bf16.msra.mxu1 %v2334_v23  ;;  %1372 = vmatprep.mubr.bf16.mxu1 %v93_v44  ;;  %v2377_v23 = vld [vmem:[#allocation5 + $0x408] ss:$12 sps:$4 sm:$0xff]  }
  0x94   :  { %1142 = vmatpush1.bf16.msra.mxu0 %v2255_v2  ;;  %2065 = vmatprep.subr.bf16.mxu1 %v2338_v25  ;;  %v2654_v2 = vpack.c.bf16 %v87_v63, %v87_v63  ;;  %v2380_v25 = vld [vmem:[#allocation5 + $0x420] ss:$12 sps:$4 sm:$0xff]  }
  0x95   :  { %1143 = vmatprep.subr.bf16.mxu0 %v2262_v3  ;;  %v2330_v3 = vld [vmem:[#allocation5 + $0x318] ss:$12 sps:$4 sm:$0xff]  }
  0x97   :  { %2066 = vmatpush3.bf16.msra.mxu1 %v2339_v28  ;;  %v2388_v28 = vld [vmem:[#allocation5 + $0x454] ss:$12 sps:$4 sm:$0xff]  }
  0x98   :  { %1144 = vmatpush1.bf16.msra.mxu0 %v2260_v7  ;;  %2067 = vmatprep.subr.bf16.mxu1 %v2343_v29  ;;  %v2340_v7 = vld [vmem:[#allocation5 + $0x348] ss:$12 sps:$4 sm:$0xff]   ;;  %v2386_v29 = vld [vmem:[#allocation5 + $0x450] ss:$12 sps:$4 sm:$0xff]  }
  0x99   :  { %1145 = vmatprep.subr.bf16.mxu0 %v2267_v9  ;;  %v2345_v9 = vld [vmem:[#allocation5 + $0x360] ss:$12 sps:$4 sm:$0xff]  }
  0x9b   :  { %2068 = vmatpush3.bf16.msra.mxu1 %v2344_v32  ;;  %v2394_v32 = vld [vmem:[#allocation5 + $0x484] ss:$12 sps:$4 sm:$0xff]  }
  0x9c   :  { %1146 = vmatpush1.bf16.msra.mxu0 %v2265_v12  ;;  %2069 = vmatprep.subr.bf16.mxu1 %v2348_v33  ;;  %v2357_v12 = vld [vmem:[#allocation5 + $0x394] ss:$12 sps:$4 sm:$0xff]  }
  0x9d   :  { %1147 = vmatprep.subr.bf16.mxu0 %v2272_v13  ;;  %v2355_v13 = vld [vmem:[#allocation5 + $0x390] ss:$12 sps:$4 sm:$0xff]   ;;  %v2392_v33 = vld [vmem:[#allocation5 + $0x480] ss:$12 sps:$4 sm:$0xff]  }
  0x9f   :  { %2070 = vmatpush3.bf16.msra.mxu1 %v2349_v36  ;;  %v2396_v36 = vld [vmem:[#allocation7] sm:$0xff]  }
  0xa0   :  { %1148 = vmatpush1.bf16.msra.mxu0 %v2270_v16  ;;  %2071 = vmatprep.subr.bf16.mxu1 %v2353_v37  ;;  %v2367_v16 = vld [vmem:[#allocation5 + $0x3c4] ss:$12 sps:$4 sm:$0xff]  }
  0xa1   :  { %1149 = vmatprep.subr.bf16.mxu0 %v2277_v17  ;;  %v2365_v17 = vld [vmem:[#allocation5 + $0x3c0] ss:$12 sps:$4 sm:$0xff]  }
  0xa2   :  { %v2397_v37 = vld [vmem:[#allocation7 + $0x48] sm:$0xff]  }
  0xa3   :  { %2072 = vmatpush3.bf16.msra.mxu1 %v2354_v40  ;;  %v2400_v40 = vld [vmem:[#allocation7 + $0x10] sm:$0xff]  }
  0xa4   :  { %1150 = vmatpush1.bf16.msra.mxu0 %v2275_v21  ;;  %2073 = vmatprep.subr.bf16.mxu1 %v2358_v41  ;;  %v2373_v21 = vld [vmem:[#allocation5 + $0x3f0] ss:$12 sps:$4 sm:$0xff]  }
  0xa5   :  { %1151 = vmatprep.subr.bf16.mxu0 %v2282_v22  ;;  %v2379_v22 = vld [vmem:[#allocation5 + $0x40c] ss:$12 sps:$4 sm:$0xff]   ;;  %v2401_v41 = vld [vmem:[#allocation7 + $0x58] sm:$0xff]  }
  0xa7   :  { %2074 = vmatpush3.bf16.msra.mxu1 %v2359_v46  ;;  %v2406_v46 = vld [vmem:[#allocation7 + $0x28] sm:$0xff]  }
  0xa8   :  { %1152 = vmatpush1.bf16.msra.mxu0 %v2280_v26  ;;  %2075 = vmatprep.subr.bf16.mxu1 %v2363_v47  ;;  %v2385_v26 = vld [vmem:[#allocation5 + $0x43c] ss:$12 sps:$4 sm:$0xff]  }
  0xa9   :  { %1153 = vmatprep.subr.bf16.mxu0 %v2287_v27  ;;  %v2383_v27 = vld [vmem:[#allocation5 + $0x438] ss:$12 sps:$4 sm:$0xff]  }
  0xab   :  { %2076 = vmatpush3.bf16.msra.mxu1 %v2364_v50 }
  0xac   :  { %1154 = vmatpush1.bf16.msra.mxu0 %v2285_v30  ;;  %2077 = vmatprep.subr.bf16.mxu1 %v2368_v51  ;;  %v2391_v30 = vld [vmem:[#allocation5 + $0x46c] ss:$12 sps:$4 sm:$0xff]  }
  0xad   :  { %1155 = vmatprep.subr.bf16.mxu0 %v2292_v31  ;;  %v2389_v31 = vld [vmem:[#allocation5 + $0x468] ss:$12 sps:$4 sm:$0xff]  }
  0xaf   :  { %2078 = vmatpush3.bf16.msra.mxu1 %v2369_v54  ;;  %v2408_v54 = vld [vmem:[#allocation7 + $0x30] sm:$0xff]  }
  0xb0   :  { %1156 = vmatpush1.bf16.msra.mxu0 %v2290_v34  ;;  %2127 = vmatprep.subr.bf16.mxu1 %v2553_v61  ;;  %v2555_v34 = vmov 0  }
  0xb1   :  { %1157 = vmatprep.subr.bf16.mxu0 %v2297_v35  ;;  %v2395_v35 = vld [vmem:[#allocation7 + $0x40] sm:$0xff]  }
  0xb2   :  { %1373 = vmatmul.mubr.bf16.vlgmr.msra.gmra.mrb[8].mxu1 %v2648_v59 }
  0xb3   :  { %2128 = vmatpush3.bf16.msra.mxu1 %v2376_v58  ;;  %2129 = vmatprep.mubr.msk.bf16.mxu1 %vm2554_vm1, %v2553_v61 }
  0xb4   :  { %1158 = vmatpush1.bf16.msra.mxu0 %v2295_v38  ;;  %2087 = vmatprep.subr.bf16.mxu1 %v2395_v35  ;;  %v2398_v38 = vld [vmem:[#allocation7 + $0x8] sm:$0xff]  }
  0xb5   :  { %1159 = vmatprep.subr.bf16.mxu0 %v2302_v39  ;;  %v2399_v39 = vld [vmem:[#allocation7 + $0x50] sm:$0xff]   ;;  %v2416_v35 = vld [vmem:[#allocation7 + $0xa8] sm:$0xff]  }
  0xb8   :  { %1160 = vmatpush1.bf16.msra.mxu0 %v2300_v43  ;;  %v2403_v43 = vld [vmem:[#allocation7 + $0x60] sm:$0xff]  }
  0xb9   :  { %1161 = vmatprep.subr.bf16.mxu0 %v2307_v45  ;;  %v2405_v45 = vld [vmem:[#allocation7 + $0x68] sm:$0xff]  }
  0xba   :  { %2130 = vmatmul.mubr.msk.bf16.vlgmr.msra.gmra.mrb[12].mxu1 %vm1092_vm0, %v2654_v2 }
  0xbb   :  { %2088 = vmatpush3.bf16.msra.mxu1 %v2396_v36  ;;  %v2417_v36 = vld [vmem:[#allocation7 + $0xb0] sm:$0xff]  }
  0xbc   :  { %1162 = vmatpush1.bf16.msra.mxu0 %v2305_v48  ;;  %2089 = vmatprep.subr.bf16.mxu1 %v2397_v37  ;;  %v2418_v37 = vld [vmem:[#allocation7 + $0xb8] sm:$0xff]  }
  0xbd   :  { %1163 = vmatprep.subr.bf16.mxu0 %v2312_v49 }
  0xbf   :  { %2090 = vmatpush3.bf16.msra.mxu1 %v2398_v38 }
  0xc0   :  { %1164 = vmatpush1.bf16.msra.mxu0 %v2310_v52  ;;  %2091 = vmatprep.subr.bf16.mxu1 %v2399_v39  ;;  %v293_v52 = vlaneseq }
  0xc1   :  { %1165 = vmatprep.subr.bf16.mxu0 %v2317_v53  ;;  %v2407_v53 = vld [vmem:[#allocation7 + $0x70] sm:$0xff]  }
  0xc2   :  { %v294_v55 = vshrl.u32 %v293_v52, 7 }
  0xc3   :  { %2092 = vmatpush3.bf16.msra.mxu1 %v2400_v40  ;;  %v2419_v40 = vld [vmem:[#allocation8] sm:$0xff]  }
  0xc4   :  { %1166 = vmatpush1.bf16.msra.mxu0 %v2315_v56  ;;  %2093 = vmatprep.subr.bf16.mxu1 %v2401_v41  ;;  %v2409_v56 = vld [vmem:[#allocation7 + $0x78] sm:$0xff]   ;;  %v303_v58 = vsub.s32 2, %v294_v55  ;;  %v2420_v41 = vld [vmem:[#allocation8 + $0x8] sm:$0xff]  }
  0xc5   :  { %1167 = vmatprep.subr.bf16.mxu0 %v2322_v57  ;;  %v2410_v57 = vld [vmem:[#allocation7 + $0x38] sm:$0xff]  }
  0xc7   :  { %2094 = vmatpush3.bf16.msra.mxu1 %v2402_v42  ;;  %v2421_v42 = vld [vmem:[#allocation8 + $0x10] sm:$0xff]  }
  0xc8   :  { %1168 = vmatpush1.bf16.msra.mxu0 %v2320_v60  ;;  %2095 = vmatprep.subr.bf16.mxu1 %v2403_v43  ;;  %v2422_v43 = vld [vmem:[#allocation8 + $0x18] sm:$0xff]  }
  0xc9   :  { %1178 = vmatprep.subr.bf16.mxu0 %v2327_v62 }
  0xcb   :  { %1170 = vmatmul.mubr.bf16.vlgmr.msra.gmra.mrb[0].mxu0 %v2645_v24  ;;  %v2382_v24 = vld [vmem:[#allocation5 + $0x424] ss:$12 sps:$4 sm:$0xff]  }
  0xcc   :  { %1179 = vmatpush1.bf16.msra.mxu0 %v2325_v0  ;;  %1210 = vmatprep.mubr.bf16.mxu0 %v93_v44  ;;  %v2404_v44 = vld [vmem:[#allocation7 + $0x20] sm:$0xff]  }
  0xcd   :  { %1180 = vmatprep.subr.bf16.mxu0 %v2332_v1  ;;  %2096 = vmatpush3.bf16.msra.mxu1 %v2404_v44  ;;  %v2423_v44 = vld [vmem:[#allocation8 + $0x20] sm:$0xff]  }
  0xce   :  { %2097 = vmatprep.subr.bf16.mxu1 %v2405_v45  ;;  %v2424_v45 = vld [vmem:[#allocation8 + $0x28] sm:$0xff]  }
  0xd0   :  { %1181 = vmatpush1.bf16.msra.mxu0 %v2330_v3 }
  0xd1   :  { %1182 = vmatprep.subr.bf16.mxu0 %v2337_v4  ;;  %2098 = vmatpush3.bf16.msra.mxu1 %v2406_v46  ;;  %v2425_v46 = vld [vmem:[#allocation8 + $0x30] sm:$0xff]  }
  0xd2   :  { %2099 = vmatprep.subr.bf16.mxu1 %v2407_v53  ;;  %v1985_v53 = vld [vmem:[%s2707_s4] ss:$0 sm:$0xff]  ;;  %s2515_s4 = scalar_lea.vmem %s1826_s8, 128 }
  0xd3   :  { %p2516_p4 = scmp.ne.s32.totalorder %s1826_s8, %s2515_s4  ;;  %p2521_p6 = scmp.lt.s32.totalorder %s2515_s4, %s2515_s4 }
  0xd4   :  { %1183 = vmatpush1.bf16.msra.mxu0 %v2335_v5 }
  0xd5   :  { %1184 = vmatprep.subr.bf16.mxu0 %v2342_v6  ;;  %2100 = vmatpush3.bf16.msra.mxu1 %v2408_v54  ;;  %p2522_p7 = por %p2521_p6, %p2520_p5 }
  0xd6   :  { %2101 = vmatprep.subr.bf16.mxu1 %v2409_v56 }
  0xd7   :  { %p2523_p8 = pnand %p2522_p7, %p2516_p4 }
  0xd8   :  { %1185 = vmatpush1.bf16.msra.mxu0 %v2340_v7 }
  0xd9   :  { %1186 = vmatprep.subr.bf16.mxu0 %v2347_v8  ;;  %2102 = vmatpush3.bf16.msra.mxu1 %v2410_v57 }
  0xda   :  { %2133 = vmatprep.subr.bf16.mxu1 %v2553_v61 }
  0xdc   :  { %1187 = vmatpush1.bf16.msra.mxu0 %v2345_v9 }
  0xdd   :  { %1188 = vmatprep.subr.bf16.mxu0 %v2352_v10 }
  0xe0   :  { %1189 = vmatpush1.bf16.msra.mxu0 %v2350_v11 }
  0xe1   :  { %1190 = vmatprep.subr.bf16.mxu0 %v2357_v12 }
  0xe4   :  { %1191 = vmatpush1.bf16.msra.mxu0 %v2355_v13 }
  0xe5   :  { %1192 = vmatprep.subr.bf16.mxu0 %v2362_v14 }
  0xe8   :  { %1193 = vmatpush1.bf16.msra.mxu0 %v2360_v15 }
  0xe9   :  { %1194 = vmatprep.subr.bf16.mxu0 %v2367_v16  ;;  %v295_v16 = vsub.s32 0, %v294_v55 }
  0xec   :  { %1195 = vmatpush1.bf16.msra.mxu0 %v2365_v17  ;;  %v299_v17 = vsub.s32 1, %v294_v55 }
  0xed   :  { %1196 = vmatprep.subr.bf16.mxu0 %v2372_v18 }
  0xf0   :  { %1197 = vmatpush1.bf16.msra.mxu0 %v2370_v19 }
  0xf1   :  { %1198 = vmatprep.subr.bf16.mxu0 %v2375_v20 }
  0xf4   :  { %1199 = vmatpush1.bf16.msra.mxu0 %v2373_v21 }
  0xf5   :  { %1200 = vmatprep.subr.bf16.mxu0 %v2379_v22 }
  0xf8   :  { %1201 = vmatpush1.bf16.msra.mxu0 %v2377_v23 }
  0xf9   :  { %1202 = vmatprep.subr.bf16.mxu0 %v2382_v24 }
  0xfc   :  { %1203 = vmatpush1.bf16.msra.mxu0 %v2380_v25 }
  0xfd   :  { %1204 = vmatprep.subr.bf16.mxu0 %v2385_v26 }
 0x100   :  { %1205 = vmatpush1.bf16.msra.mxu0 %v2383_v27 }
 0x101   :  { %1206 = vmatprep.subr.bf16.mxu0 %v2388_v28 }
 0x104   :  { %1207 = vmatpush1.bf16.msra.mxu0 %v2386_v29  ;;  %v2411_v29 = vld [vmem:[#allocation7 + $0x80] sm:$0xff]  }
 0x105   :  { %1208 = vmatprep.subr.bf16.mxu0 %v2391_v30 }
 0x108   :  { %1209 = vmatpush1.bf16.msra.mxu0 %v2389_v31  ;;  %v2412_v31 = vld [vmem:[#allocation7 + $0x88] sm:$0xff]  }
 0x109   :  { %1219 = vmatprep.subr.bf16.mxu0 %v2394_v32  ;;  %v2413_v32 = vld [vmem:[#allocation7 + $0x90] sm:$0xff]  }
 0x10b   :  { %1211 = vmatmul.mubr.bf16.vlgmr.msra.gmra.mrb[0].mxu0 %v2648_v59  ;;  %v291_v59 = vld [vmem:[%s2705_s2] sm:$0x7] }
 0x10c   :  { %1220 = vmatpush1.bf16.msra.mxu0 %v2392_v33  ;;  %1251 = vmatprep.mubr.bf16.mxu0 %v2555_v34  ;;  %v304_v60 = vrot.slane %v291_v59, %v303_v58  ;;  %v296_v18 = vrot.slane %v291_v59, %v295_v16  ;;  %v300_v19 = vrot.slane %v291_v59, %v299_v17  ;;  %v2414_v33 = vld [vmem:[#allocation7 + $0x98] sm:$0xff]   ;;  %v2415_v34 = vld [vmem:[#allocation7 + $0xa0] sm:$0xff]  }
 0x117   :  { %1983 = vmatmul.mubr.msk.bf16.vlgmr.msra.gmra.mrb[0].mxu0 %vm1092_vm0, %v2654_v2 }
 0x145   :  { %v2035_v47 = vpop.f32.mrb[0].mxu1 }
 0x146   :  { %v2036_v48 = vpop.f32.mrb[1].mxu1 }
 0x147   :  { %v2037_v49 = vadd.f32 %v2036_v48, %v2035_v47  ;;  %v2038_v50 = vpop.f32.mrb[2].mxu1  ;;  %v2426_v47 = vld [vmem:[#allocation8 + $0x38] sm:$0xff]  }
 0x148   :  { %v2039_v51 = vpop.f32.mrb[3].mxu1 }
 0x149   :  { %v1295_v62 = vadd.f32 %v2037_v49, %v304_v60 }
 0x165   :  { %v2057_v63 = vpop.f32.mrb[4].mxu1 }
 0x166   :  { %v2058_v0 = vpop.f32.mrb[5].mxu1 }
 0x167   :  { %v2059_v1 = vadd.f32 %v2058_v0, %v2057_v63  ;;  %v2060_v2 = vpop.f32.mrb[6].mxu1 }
 0x168   :  { %v2061_v3 = vpop.f32.mrb[7].mxu1 }
 0x169   :  { %v1335_v4 = vadd.f32 %v2059_v1, %v1295_v62 }
 0x185   :  { %v2079_v5 = vpop.f32.mrb[8].mxu1 }
 0x186   :  { %v2080_v6 = vpop.f32.mrb[9].mxu1 }
 0x187   :  { %v2081_v7 = vadd.f32 %v2080_v6, %v2079_v5  ;;  %v2082_v8 = vpop.f32.mrb[10].mxu1 }
 0x188   :  { %v2083_v9 = vpop.f32.mrb[11].mxu1 }
 0x189   :  { %v1375_v10 = vadd.f32 %v2081_v7, %v1335_v4 }
 0x18d   :  { %v1414_v11 = vpop.f32.mrb[12].mxu1 }
 0x18e   :  { %v1415_v12 = vadd.f32 %v1414_v11, %v1375_v10  ;;  %v2131_v13 = vpop.f32.mrb[13].mxu1 }
 0x18f   :  { %v1417_v14 = vpop.f32.mrb[14].mxu1 }
 0x190   :  { %v2132_v15 = vpop.f32.mrb[15].mxu1  ;;  %v1422_v38 = vmax.f32 %v1415_v12, 0.0 }
 0x192   :  { %v1425_v39 = vpack.c.bf16 %v1422_v38, %v1422_v38 }
 0x1ea   :  { %v1253_v20 = vpop.f32.mrb[0].mxu0 }
 0x1eb   :  { %v2173_v21 = vadd.f32 %v1253_v20, %v296_v18  ;;  %v1255_v22 = vpop.f32.mrb[1].mxu0 }
 0x1ec   :  { %v2174_v23 = vadd.f32 %v1255_v22, %v300_v19  ;;  %v1257_v24 = vpop.f32.mrb[2].mxu0 }
 0x1ed   :  { %v1420_v25 = vmax.f32 %v2173_v21, 0.0  ;;  %v1258_v26 = vpop.f32.mrb[3].mxu0 }
 0x1ee   :  { %v1421_v27 = vmax.f32 %v2174_v23, 0.0 }
 0x1ef   :  { %v1423_v30 = vpack.c.bf16 %v1420_v25, %v1420_v25 }
 0x1f0   :  { %v1424_v28 = vpack.c.bf16 %v1421_v27, %v1421_v27 }
 0x1f2   :  { %1657 = vmatprep.mubr.bf16.mxu1 %v1424_v28 }
 0x1f3   :  { %1658 = vmatmul.mubr.bf16.vlgmr.msra.gmra.mrb[16].mxu1 %v1423_v30 }
 0x1f4   :  { %2134 = vmatpush3.bf16.msra.mxu1 %v2411_v29  ;;  %2149 = vmatprep.mubr.msk.bf16.mxu1 %vm2554_vm1, %v2553_v61 }
 0x1f5   :  { %2135 = vmatprep.subr.bf16.mxu1 %v2553_v61 }
 0x1f8   :  { %2136 = vmatpush3.bf16.msra.mxu1 %v2412_v31 }
 0x1f9   :  { %2137 = vmatprep.subr.bf16.mxu1 %v2553_v61 }
 0x1fc   :  { %2138 = vmatpush3.bf16.msra.mxu1 %v2413_v32 }
 0x1fd   :  { %2139 = vmatprep.subr.bf16.mxu1 %v2553_v61 }
 0x200   :  { %2140 = vmatpush3.bf16.msra.mxu1 %v2414_v33 }
 0x201   :  { %2141 = vmatprep.subr.bf16.mxu1 %v2553_v61 }
 0x204   :  { %2142 = vmatpush3.bf16.msra.mxu1 %v2415_v34 }
 0x205   :  { %2143 = vmatprep.subr.bf16.mxu1 %v2553_v61 }
 0x208   :  { %2144 = vmatpush3.bf16.msra.mxu1 %v2416_v35 }
 0x209   :  { %2145 = vmatprep.subr.bf16.mxu1 %v2553_v61 }
 0x20c   :  { %2146 = vmatpush3.bf16.msra.mxu1 %v2417_v36 }
 0x20d   :  { %2147 = vmatprep.subr.bf16.mxu1 %v2553_v61 }
 0x210   :  { %2148 = vmatpush3.bf16.msra.mxu1 %v2418_v37 }
 0x211   :  { %2153 = vmatprep.subr.bf16.mxu1 %v2553_v61 }
 0x213   :  { %2150 = vmatmul.mubr.bf16.vlgmr.msra.gmra.mrb[20].mxu1 %v1425_v39 }
 0x214   :  { %2169 = vmatprep.mubr.msk.bf16.mxu1 %vm2554_vm1, %v2553_v61  ;;  %2154 = vmatpush3.bf16.msra.mxu1 %v2419_v40 }
 0x215   :  { %2155 = vmatprep.subr.bf16.mxu1 %v2553_v61 }
 0x218   :  { %2156 = vmatpush3.bf16.msra.mxu1 %v2420_v41 }
 0x219   :  { %2157 = vmatprep.subr.bf16.mxu1 %v2553_v61 }
 0x21c   :  { %2158 = vmatpush3.bf16.msra.mxu1 %v2421_v42 }
 0x21d   :  { %2159 = vmatprep.subr.bf16.mxu1 %v2553_v61 }
 0x220   :  { %2160 = vmatpush3.bf16.msra.mxu1 %v2422_v43 }
 0x221   :  { %2161 = vmatprep.subr.bf16.mxu1 %v2553_v61 }
 0x224   :  { %2162 = vmatpush3.bf16.msra.mxu1 %v2423_v44 }
 0x225   :  { %2163 = vmatprep.subr.bf16.mxu1 %v2553_v61 }
 0x228   :  { %2164 = vmatpush3.bf16.msra.mxu1 %v2424_v45 }
 0x229   :  { %2165 = vmatprep.subr.bf16.mxu1 %v2553_v61 }
 0x22c   :  { %2166 = vmatpush3.bf16.msra.mxu1 %v2425_v46 }
 0x22d   :  { %2167 = vmatprep.subr.bf16.mxu1 %v2553_v61  ;;  %v2010_v61 = vld [vmem:[%s2709_s6] ss:$0 sm:$0xff] }
 0x230   :  { %2168 = vmatpush3.bf16.msra.mxu1 %v2426_v47 }
 0x2c6   :  { %v2103_v48 = vpop.f32.mrb[16].mxu1 }
 0x2c7   :  { %v2104_v49 = vpop.f32.mrb[17].mxu1 }
 0x2c8   :  { %v2105_v50 = vadd.f32 %v2104_v49, %v2103_v48  ;;  %v2106_v51 = vpop.f32.mrb[18].mxu1 }
 0x2c9   :  { %v2107_v52 = vpop.f32.mrb[19].mxu1 }
 0x2ca   :  { %v1660_v54 = vadd.f32 %v2105_v50, %v1985_v53 }
 0x2e6   :  { %v1699_v55 = vpop.f32.mrb[20].mxu1 }
 0x2e7   :  { %v1700_v56 = vadd.f32 %v1699_v55, %v1660_v54  ;;  %v2151_v57 = vpop.f32.mrb[21].mxu1 }
 0x2e8   :  { %v1702_v58 = vpop.f32.mrb[22].mxu1 }
 0x2e9   :  { %v1705_v59 = vmax.f32 %v1700_v56, 0.0  ;;  %v2152_v60 = vpop.f32.mrb[23].mxu1 }
 0x2eb   :  { %v1706_v62 = vpack.c.bf16 %v1705_v59, %v1705_v59 }
 0x2ed   :  { %2170 = vmatmul.mubr.bf16.vlgmr.msra.gmra.mrb[24].mxu1 %v1706_v62 }
 0x3c0   :  { %v1812_v63 = vpop.f32.mrb[24].mxu1 }
 0x3c1   :  { %v1813_v0 = vadd.f32 %v2010_v61, %v1812_v63  ;;  %v2171_v1 = vpop.f32.mrb[25].mxu1 }
 0x3c2   :  { %v1815_v2 = vpop.f32.mrb[26].mxu1 }
 0x3c3   :  { %1818 = vst [vmem:[#allocation10] sm:$0xff] %v1813_v0  ;;  %v2172_v3 = vpop.f32.mrb[27].mxu1 }
 0x3c4   :  { %2526 = shalt.err (!%p2523_p8)
}
 0x3c5   :  { %s2527_s6 = scalar_lea.hbm %s2710_s7, 128 }
 0x3c6   :  { %p2528_p9 = scmp.ne.s32.totalorder %s2710_s7, %s2527_s6  ;;  %p2531_p10 = scmp.lt.u32.totalorder %s2527_s6, %s2710_s7 }
 0x3c8   :  { %p2533_p11 = pnand %p2531_p10, %p2528_p9 }
 0x3ca   :  { %2536 = shalt.err (!%p2533_p11)
}
 0x3cb   :  { %1828 = dma.vmem_to_hbm [thread:$0]  %s1826_s8, 128, %s2710_s7, [#allocation4]  }
 0x3cc   :  { %2543 = dma.done.wait [#allocation4], 128  }
 0x3cd   :  { %2544 = vsyncadd [#allocation4], 4294967168 }
 0x3ce   :  { %1832 = vsyncpa [#allocation3], 1 }
 0x3cf   :  { %1833 = vsyncpa [#allocation6], 1 }
 0x3d0   :  { %1834 = vsyncpa [#allocation9], 1 }
 0x3d1   :  { %1835 = vsyncpa [#allocation4], 1 }

</bundles_post_ra>
